<compile_context>
chip_gen: v6e
topology: v6e:2x2x1
jax: 0.10.0
libtpu: 0.0.40
codegen_flags: <defaults>
</compile_context>

<pallas_src>
import functools

import jax
import jax.numpy as jnp
from jax.experimental import pallas as pl
from jax.experimental.pallas import tpu as pltpu

# ---- module-consistent sizes --------------------------------------------
DIM = 3        # input point dimension
C_DIM = 32     # latent code dim
HIDDEN = 32    # hidden size of decoder MLP
N_BLOCKS = 3   # number of ResnetBlockFC blocks
D_OUT = 1      # occupancy output (fc_out reduction assumes d_out == 1)
PADDING = 0.1
SUBLANE = 8


def _default_pack():
    """Pack factor: fill one MXU tile (128 lanes on v5e -> P=4, 256 on
    v6e/v7x -> P=8)."""
    try:
        kind = jax.devices()[0].device_kind.lower()
        if "v5 lite" in kind or "v5e" in kind or "v5litepod" in kind:
            return 4
    except Exception:
        pass
    return 8


# ------------------------- Pallas kernel ---------------------------------
def _decoder_kernel(net0_ref, c_ref,
                    wc_ref, bc_ref,
                    w0_ref, b0_ref,
                    w1_ref, b1_ref,
                    wo_ref, bo_ref,
                    out_ref, *, n_blocks, hp):
    f32 = jnp.float32
    bf16 = jnp.bfloat16

    net = net0_ref[...]                                    # [tn_p, hp] f32

    # ---- all fc_c projections in ONE bf16 MXU matmul (f32 accumulation) ---
    cc = jnp.dot(c_ref[...], wc_ref[...],
                 preferred_element_type=f32) + bc_ref[...]  # [tn_p, nb*hp]

    for i in range(n_blocks):
        # net = net + fc_c[i](c)
        net = net + cc[:, i * hp:(i + 1) * hp]
        # ResnetBlockFC (size_in == size_out -> identity shortcut),
        # bf16 operands, f32 accumulation.
        h = jnp.dot(jnp.maximum(net, 0.0).astype(bf16), w0_ref[i],
                    preferred_element_type=f32) + b0_ref[i]
        dx = jnp.dot(jnp.maximum(h, 0.0).astype(bf16), w1_ref[i],
                     preferred_element_type=f32) + b1_ref[i]
        net = net + dx

    # ---- fc_out: block-diagonal [hp, P] weight -> [tn_p, P] block ---------
    out = jnp.dot(jnp.maximum(net, 0.0).astype(bf16), wo_ref[...],
                  preferred_element_type=f32) + bo_ref[0, 0]
    out_ref[...] = out


def decoder_mlp(net0, c, packed, *, pack, tile_rows=4096):
    """net0: [N, HIDDEN] f32 (fc_p already applied), c: [N, C_DIM] f32.
    Returns [N] f32 logits."""
    wcP, bcP, w0P, b0P, w1P, b1P, woP, bo = packed
    N, H = net0.shape
    HP = H * pack

    # Pad only to a multiple of the pack factor (required for the packed
    # reshape); the ragged last grid tile is masked by Pallas itself.
    np_rows = -(-N // pack)
    n_pad = np_rows * pack
    if n_pad != N:
        net0 = jnp.pad(net0, ((0, n_pad - N), (0, 0)))
        c = jnp.pad(c, ((0, n_pad - N), (0, 0)))
    net0_p = net0.reshape(np_rows, HP)                    # f32 packed stream
    c_p = c.astype(jnp.bfloat16).reshape(np_rows, HP)     # bf16 packed stream

    # Row tiling: large tiles to amortize the ~0.35us per-step overhead, but
    # keep >= 2 grid steps when possible (v7x has 2 TensorCores).
    tile_np = max(SUBLANE, (tile_rows // pack) // SUBLANE * SUBLANE)
    if np_rows <= tile_np:
        half = -(-np_rows // 2)
        tn_p = max(SUBLANE, -(-half // SUBLANE) * SUBLANE)
    else:
        tn_p = tile_np
    n_grid = -(-np_rows // tn_p)

    def full_spec(a):
        nd = a.ndim
        return pl.BlockSpec(a.shape, lambda i, nd=nd: (0,) * nd)

    kernel = functools.partial(_decoder_kernel, n_blocks=N_BLOCKS, hp=HP)
    out = pl.pallas_call(
        kernel,
        out_shape=jax.ShapeDtypeStruct((np_rows, pack), jnp.float32),
        grid=(n_grid,),
        in_specs=[
            pl.BlockSpec((tn_p, HP), lambda i: (i, 0)),       # net0 (f32)
            pl.BlockSpec((tn_p, HP), lambda i: (i, 0)),       # c    (bf16)
            full_spec(wcP), full_spec(bcP),
            full_spec(w0P), full_spec(b0P),
            full_spec(w1P), full_spec(b1P),
            full_spec(woP),
            pl.BlockSpec(memory_space=pltpu.MemorySpace.SMEM),  # bo scalar
        ],
        out_specs=pl.BlockSpec((tn_p, pack), lambda i: (i, 0)),
        compiler_params=pltpu.CompilerParams(
            dimension_semantics=("parallel",)),
    )(net0_p, c_p, wcP, bcP, w0P, b0P, w1P, b1P, woP, bo)
    return out.reshape(n_pad)[:N]


# ---------------------- JAX glue: plane feature sampling ------------------
def normalize_coordinate(p, padding=0.1, plane='xz'):
    if plane == 'xz':
        xy = p[:, :, (0, 2)]
    elif plane == 'xy':
        xy = p[:, :, (0, 1)]
    else:
        xy = p[:, :, (1, 2)]
    xy = xy / (1.0 + padding + 1e-5) + 0.5
    xy = jnp.where(xy >= 1.0, 1.0 - 1e-5, xy)
    xy = jnp.where(xy < 0.0, 0.0, xy)
    return xy


def sample_plane_feature(p, c, plane, padding=0.1):
    """Bilinear F.grid_sample(align_corners=True, padding_mode='border').

    p: [B, T, 3], c: [B, C, H, W] (NCHW) -> [B, T, C] (channels-last).
    """
    # TODO(synk): the grid_sample gather is data-dependent indexing; it stays
    # in plain JAX rather than the Pallas kernel.
    xy = normalize_coordinate(p, padding=padding, plane=plane)   # [B, T, 2]
    B, C, H, W = c.shape
    ix = jnp.clip(xy[..., 0] * (W - 1), 0.0, W - 1)   # x indexes width
    iy = jnp.clip(xy[..., 1] * (H - 1), 0.0, H - 1)   # y indexes height
    x0 = jnp.floor(ix)
    y0 = jnp.floor(iy)
    wx1 = ix - x0
    wx0 = 1.0 - wx1
    wy1 = iy - y0
    wy0 = 1.0 - wy1
    x0i = jnp.clip(x0, 0, W - 1).astype(jnp.int32)
    x1i = jnp.clip(x0 + 1.0, 0, W - 1).astype(jnp.int32)
    y0i = jnp.clip(y0, 0, H - 1).astype(jnp.int32)
    y1i = jnp.clip(y0 + 1.0, 0, H - 1).astype(jnp.int32)

    feat = jnp.transpose(c, (0, 2, 3, 1)).reshape(B, H * W, C)   # [B, HW, C]

    def gather(yi, xi):
        idx = (yi * W + xi)[..., None]                           # [B, T, 1]
        return jnp.take_along_axis(feat, idx, axis=1)            # [B, T, C]

    v00 = gather(y0i, x0i)
    v01 = gather(y0i, x1i)
    v10 = gather(y1i, x0i)
    v11 = gather(y1i, x1i)
    out = (v00 * (wy0 * wx0)[..., None] + v01 * (wy0 * wx1)[..., None] +
           v10 * (wy1 * wx0)[..., None] + v11 * (wy1 * wx1)[..., None])
    return out


# ---------------------- parameter construction ---------------------------
def make_linear(key, fan_in, fan_out, zero_w=False):
    """PyTorch nn.Linear default init; weights stored as [in, out]."""
    kw, kb = jax.random.split(key)
    bound = 1.0 / float(fan_in) ** 0.5
    if zero_w:
        w = jnp.zeros((fan_in, fan_out), jnp.float32)
    else:
        w = jax.random.uniform(kw, (fan_in, fan_out), jnp.float32, -bound, bound)
    b = jax.random.uniform(kb, (fan_out,), jnp.float32, -bound, bound)
    return w, b


def make_params(key):
    """Raw (unpacked, f32) parameters — the reference uses these directly."""
    keys = jax.random.split(key, 2 + 3 * N_BLOCKS)
    wp, bp = make_linear(keys[0], DIM, HIDDEN)
    wo, bo = make_linear(keys[1], HIDDEN, D_OUT)       # wo [H,1], bo [1]
    raw = dict(wp=wp, bp=bp, wo=wo, bo=bo,
               wc=[], bc=[], w0=[], b0=[], w1=[], b1=[])
    for i in range(N_BLOCKS):
        wci, bci = make_linear(keys[2 + 3 * i], C_DIM, HIDDEN)
        w0i, b0i = make_linear(keys[3 + 3 * i], HIDDEN, HIDDEN)
        # fc_1 weight is zero-initialized in ResnetBlockFC (nn.init.zeros_)
        w1i, b1i = make_linear(keys[4 + 3 * i], HIDDEN, HIDDEN, zero_w=True)
        raw['wc'].append(wci); raw['bc'].append(bci)
        raw['w0'].append(w0i); raw['b0'].append(b0i)
        raw['w1'].append(w1i); raw['b1'].append(b1i)
    return raw


def _kron_blockdiag(w, pack):
    """[k, m] -> [k*pack, m*pack] block-diagonal (same W on each block)."""
    return jnp.kron(jnp.eye(pack, dtype=w.dtype), w)


def pack_params(raw, pack):
    """Build the lane-packed, block-diagonal bf16 kernel weights."""
    wcP = jnp.concatenate(
        [_kron_blockdiag(w, pack) for w in raw['wc']], axis=1
    ).astype(jnp.bfloat16)                                       # [HP, nb*HP]
    bcP = jnp.concatenate(
        [jnp.tile(b, pack) for b in raw['bc']]).reshape(1, -1)   # f32
    w0P = jnp.stack(
        [_kron_blockdiag(w, pack) for w in raw['w0']]).astype(jnp.bfloat16)
    b0P = jnp.stack([jnp.tile(b, pack) for b in raw['b0']])[:, None, :]
    w1P = jnp.stack(
        [_kron_blockdiag(w, pack) for w in raw['w1']]).astype(jnp.bfloat16)
    b1P = jnp.stack([jnp.tile(b, pack) for b in raw['b1']])[:, None, :]
    woP = _kron_blockdiag(raw['wo'], pack).astype(jnp.bfloat16)  # [HP, pack]
    bo = raw['bo'].reshape(1, 1)                                 # f32, SMEM
    return (wcP, bcP, w0P, b0P, w1P, b1P, woP, bo)


# ---------------------- full forward (module equivalent) -----------------
def local_decoder_forward(p, c_plane, raw, packed, pack):
    B, T, _ = p.shape
    # TODO(synk): 'grid' (3-D volume) features of the original module are not
    # implemented; only the three plane features are handled.
    c = jnp.zeros((B, T, C_DIM), jnp.float32)
    for plane in ('xz', 'xy', 'yz'):
        if plane in c_plane:
            c = c + sample_plane_feature(p, c_plane[plane], plane, PADDING)
    p_flat = p.reshape(B * T, DIM).astype(jnp.float32)
    c_flat = c.reshape(B * T, C_DIM)
    # fc_p stays in plain XLA: a [N,3]@[3,32] is a degenerate MXU shape and
    # its 12-byte rows would be a terrible Pallas input stream.
    net0 = p_flat @ raw['wp'] + raw['bp'][None, :]
    out = decoder_mlp(net0, c_flat, packed, pack=pack)           # [B*T]
    return out.reshape(B, T)                                     # squeeze(-1)


def reference_mlp(p_flat, c_flat, raw):
    """Plain-JAX reference of the kernel's hot path with matching bf16
    quantization (operands bf16, accumulation f32)."""
    f32 = jnp.float32
    bf16 = jnp.bfloat16

    def mm(x, w):
        return jnp.dot(x.astype(bf16), w.astype(bf16),
                       preferred_element_type=f32)

    net = p_flat @ raw['wp'] + raw['bp'][None, :]
    cq = c_flat.astype(bf16)
    for i in range(N_BLOCKS):
        cc = mm(cq, raw['wc'][i]) + raw['bc'][i][None, :]
        net = net + cc
        h = mm(jnp.maximum(net, 0.0), raw['w0'][i]) + raw['b0'][i][None, :]
        dx = mm(jnp.maximum(h, 0.0), raw['w1'][i]) + raw['b1'][i][None, :]
        net = net + dx
    out = mm(jnp.maximum(net, 0.0), raw['wo']) + raw['bo'][None, :]   # [N, 1]
    return out[:, 0]


if __name__ == "__main__":
    key = jax.random.PRNGKey(0)
    k_p, k_xz, k_xy, k_yz, k_par = jax.random.split(key, 5)

    B, T, RES = 2, 64, 8
    p = jax.random.uniform(k_p, (B, T, DIM), jnp.float32,
                           minval=-0.5, maxval=0.5)
    c_plane = {
        'xz': jax.random.normal(k_xz, (B, C_DIM, RES, RES), jnp.float32),
        'xy': jax.random.normal(k_xy, (B, C_DIM, RES, RES), jnp.float32),
        'yz': jax.random.normal(k_yz, (B, C_DIM, RES, RES), jnp.float32),
    }

    pack = _default_pack()
    raw = make_params(k_par)
    packed = pack_params(raw, pack)

    out = local_decoder_forward(p, c_plane, raw, packed, pack)
    out = jax.block_until_ready(out)
    assert out.shape == (B, T)

    # sanity check against a plain-JAX reference of the kernel's hot path
    c = jnp.zeros((B, T, C_DIM), jnp.float32)
    for plane in ('xz', 'xy', 'yz'):
        c = c + sample_plane_feature(p, c_plane[plane], plane, PADDING)
    ref = reference_mlp(p.reshape(B * T, DIM),
                        c.reshape(B * T, C_DIM), raw).reshape(B, T)
    assert jnp.allclose(out, ref, atol=1e-3, rtol=1e-3), \
        float(jnp.max(jnp.abs(out - ref)))

    print("KERNEL_OK")
</pallas_src>

<mosaic_0001>
module attributes {stable_mosaic.version = 11 : i64} {
  func.func @_decoder_kernel(%arg0: i32, %arg1: memref<8x256xf32, #tpu.memory_space<vmem>>, %arg2: memref<8x256xbf16, #tpu.memory_space<vmem>>, %arg3: memref<256x768xbf16, #tpu.memory_space<vmem>>, %arg4: memref<1x768xf32, #tpu.memory_space<vmem>>, %arg5: memref<3x256x256xbf16, #tpu.memory_space<vmem>>, %arg6: memref<3x1x256xf32, #tpu.memory_space<vmem>>, %arg7: memref<3x256x256xbf16, #tpu.memory_space<vmem>>, %arg8: memref<3x1x256xf32, #tpu.memory_space<vmem>>, %arg9: memref<256x8xbf16, #tpu.memory_space<vmem>>, %arg10: memref<1x1xf32, #tpu.memory_space<smem>>, %arg11: memref<8x8xf32, #tpu.memory_space<vmem>>) attributes {dimension_semantics = [#tpu.dimension_semantics<parallel>], iteration_bounds = array<i64: 2>, scalar_prefetch = 0 : i64, scratch_operands = 0 : i64, tpu.core_type = #tpu.core_type<tc>, window_params = [{transform_indices = @transform_0, window_bounds = array<i64: 8, 256>}, {transform_indices = @transform_1, window_bounds = array<i64: 8, 256>}, {pipeline_mode = #tpu.pipeline_mode<synchronous>, transform_indices = @transform_2, window_bounds = array<i64: 256, 768>}, {pipeline_mode = #tpu.pipeline_mode<synchronous>, transform_indices = @transform_3, window_bounds = array<i64: 1, 768>}, {pipeline_mode = #tpu.pipeline_mode<synchronous>, transform_indices = @transform_4, window_bounds = array<i64: 3, 256, 256>}, {pipeline_mode = #tpu.pipeline_mode<synchronous>, transform_indices = @transform_5, window_bounds = array<i64: 3, 1, 256>}, {pipeline_mode = #tpu.pipeline_mode<synchronous>, transform_indices = @transform_6, window_bounds = array<i64: 3, 256, 256>}, {pipeline_mode = #tpu.pipeline_mode<synchronous>, transform_indices = @transform_7, window_bounds = array<i64: 3, 1, 256>}, {pipeline_mode = #tpu.pipeline_mode<synchronous>, transform_indices = @transform_8, window_bounds = array<i64: 256, 8>}, {transform_indices = @transform_9, window_bounds = array<i64: 1, 1>}, {transform_indices = @transform_10, window_bounds = array<i64: 8, 8>}]} {
    %c0 = arith.constant 0 : index
    %c0_0 = arith.constant 0 : index
    %0 = vector.load %arg1[%c0, %c0_0] : memref<8x256xf32, #tpu.memory_space<vmem>>, vector<8x256xf32>
    %c0_1 = arith.constant 0 : index
    %c0_2 = arith.constant 0 : index
    %1 = vector.load %arg2[%c0_1, %c0_2] : memref<8x256xbf16, #tpu.memory_space<vmem>>, vector<8x256xbf16>
    %c0_3 = arith.constant 0 : index
    %c0_4 = arith.constant 0 : index
    %2 = vector.load %arg3[%c0_3, %c0_4] : memref<256x768xbf16, #tpu.memory_space<vmem>>, vector<256x768xbf16>
    %cst = arith.constant dense<0.000000e+00> : vector<8x768xf32>
    %3 = tpu.matmul %1, %2, %cst {dimension_numbers = #tpu.dot_dimension_numbers<[1], [0], [0], [1], [0, 0, 1, 1], [], []>} : vector<8x256xbf16>, vector<256x768xbf16>, vector<8x768xf32> -> vector<8x768xf32>
    %c0_5 = arith.constant 0 : index
    %c0_6 = arith.constant 0 : index
    %4 = vector.load %arg4[%c0_5, %c0_6] : memref<1x768xf32, #tpu.memory_space<vmem>>, vector<1x768xf32>
    %5 = vector.broadcast %4 : vector<1x768xf32> to vector<8x768xf32>
    %6 = arith.addf %3, %5 : vector<8x768xf32>
    %7 = vector.extract_strided_slice %6 {offsets = [0, 0], sizes = [8, 256], strides = [1, 1]} : vector<8x768xf32> to vector<8x256xf32>
    %8 = arith.addf %0, %7 : vector<8x256xf32>
    %cst_7 = arith.constant 0.000000e+00 : f32
    %9 = vector.broadcast %cst_7 : f32 to vector<8x256xf32>
    %10 = arith.maximumf %8, %9 : vector<8x256xf32>
    %11 = arith.truncf %10 : vector<8x256xf32> to vector<8x256xbf16>
    %c0_8 = arith.constant 0 : index
    %c0_9 = arith.constant 0 : index
    %c0_10 = arith.constant 0 : index
    %12 = vector.load %arg5[%c0_8, %c0_9, %c0_10] : memref<3x256x256xbf16, #tpu.memory_space<vmem>>, vector<1x256x256xbf16>
    %13 = vector.shape_cast %12 : vector<1x256x256xbf16> to vector<256x256xbf16>
    %cst_11 = arith.constant dense<0.000000e+00> : vector<8x256xf32>
    %14 = tpu.matmul %11, %13, %cst_11 {dimension_numbers = #tpu.dot_dimension_numbers<[1], [0], [0], [1], [0, 0, 1, 1], [], []>} : vector<8x256xbf16>, vector<256x256xbf16>, vector<8x256xf32> -> vector<8x256xf32>
    %c0_12 = arith.constant 0 : index
    %c0_13 = arith.constant 0 : index
    %c0_14 = arith.constant 0 : index
    %15 = vector.load %arg6[%c0_12, %c0_13, %c0_14] : memref<3x1x256xf32, #tpu.memory_space<vmem>>, vector<1x1x256xf32>
    %16 = vector.shape_cast %15 : vector<1x1x256xf32> to vector<1x256xf32>
    %17 = vector.broadcast %16 : vector<1x256xf32> to vector<8x256xf32>
    %18 = arith.addf %14, %17 : vector<8x256xf32>
    %cst_15 = arith.constant 0.000000e+00 : f32
    %19 = vector.broadcast %cst_15 : f32 to vector<8x256xf32>
    %20 = arith.maximumf %18, %19 : vector<8x256xf32>
    %21 = arith.truncf %20 : vector<8x256xf32> to vector<8x256xbf16>
    %c0_16 = arith.constant 0 : index
    %c0_17 = arith.constant 0 : index
    %c0_18 = arith.constant 0 : index
    %22 = vector.load %arg7[%c0_16, %c0_17, %c0_18] : memref<3x256x256xbf16, #tpu.memory_space<vmem>>, vector<1x256x256xbf16>
    %23 = vector.shape_cast %22 : vector<1x256x256xbf16> to vector<256x256xbf16>
    %cst_19 = arith.constant dense<0.000000e+00> : vector<8x256xf32>
    %24 = tpu.matmul %21, %23, %cst_19 {dimension_numbers = #tpu.dot_dimension_numbers<[1], [0], [0], [1], [0, 0, 1, 1], [], []>} : vector<8x256xbf16>, vector<256x256xbf16>, vector<8x256xf32> -> vector<8x256xf32>
    %c0_20 = arith.constant 0 : index
    %c0_21 = arith.constant 0 : index
    %c0_22 = arith.constant 0 : index
    %25 = vector.load %arg8[%c0_20, %c0_21, %c0_22] : memref<3x1x256xf32, #tpu.memory_space<vmem>>, vector<1x1x256xf32>
    %26 = vector.shape_cast %25 : vector<1x1x256xf32> to vector<1x256xf32>
    %27 = vector.broadcast %26 : vector<1x256xf32> to vector<8x256xf32>
    %28 = arith.addf %24, %27 : vector<8x256xf32>
    %29 = arith.addf %8, %28 : vector<8x256xf32>
    %30 = vector.extract_strided_slice %6 {offsets = [0, 256], sizes = [8, 256], strides = [1, 1]} : vector<8x768xf32> to vector<8x256xf32>
    %31 = arith.addf %29, %30 : vector<8x256xf32>
    %cst_23 = arith.constant 0.000000e+00 : f32
    %32 = vector.broadcast %cst_23 : f32 to vector<8x256xf32>
    %33 = arith.maximumf %31, %32 : vector<8x256xf32>
    %34 = arith.truncf %33 : vector<8x256xf32> to vector<8x256xbf16>
    %c1 = arith.constant 1 : index
    %c0_24 = arith.constant 0 : index
    %c0_25 = arith.constant 0 : index
    %35 = vector.load %arg5[%c1, %c0_24, %c0_25] : memref<3x256x256xbf16, #tpu.memory_space<vmem>>, vector<1x256x256xbf16>
    %36 = vector.shape_cast %35 : vector<1x256x256xbf16> to vector<256x256xbf16>
    %cst_26 = arith.constant dense<0.000000e+00> : vector<8x256xf32>
    %37 = tpu.matmul %34, %36, %cst_26 {dimension_numbers = #tpu.dot_dimension_numbers<[1], [0], [0], [1], [0, 0, 1, 1], [], []>} : vector<8x256xbf16>, vector<256x256xbf16>, vector<8x256xf32> -> vector<8x256xf32>
    %c1_27 = arith.constant 1 : index
    %c0_28 = arith.constant 0 : index
    %c0_29 = arith.constant 0 : index
    %38 = vector.load %arg6[%c1_27, %c0_28, %c0_29] : memref<3x1x256xf32, #tpu.memory_space<vmem>>, vector<1x1x256xf32>
    %39 = vector.shape_cast %38 : vector<1x1x256xf32> to vector<1x256xf32>
    %40 = vector.broadcast %39 : vector<1x256xf32> to vector<8x256xf32>
    %41 = arith.addf %37, %40 : vector<8x256xf32>
    %cst_30 = arith.constant 0.000000e+00 : f32
    %42 = vector.broadcast %cst_30 : f32 to vector<8x256xf32>
    %43 = arith.maximumf %41, %42 : vector<8x256xf32>
    %44 = arith.truncf %43 : vector<8x256xf32> to vector<8x256xbf16>
    %c1_31 = arith.constant 1 : index
    %c0_32 = arith.constant 0 : index
    %c0_33 = arith.constant 0 : index
    %45 = vector.load %arg7[%c1_31, %c0_32, %c0_33] : memref<3x256x256xbf16, #tpu.memory_space<vmem>>, vector<1x256x256xbf16>
    %46 = vector.shape_cast %45 : vector<1x256x256xbf16> to vector<256x256xbf16>
    %cst_34 = arith.constant dense<0.000000e+00> : vector<8x256xf32>
    %47 = tpu.matmul %44, %46, %cst_34 {dimension_numbers = #tpu.dot_dimension_numbers<[1], [0], [0], [1], [0, 0, 1, 1], [], []>} : vector<8x256xbf16>, vector<256x256xbf16>, vector<8x256xf32> -> vector<8x256xf32>
    %c1_35 = arith.constant 1 : index
    %c0_36 = arith.constant 0 : index
    %c0_37 = arith.constant 0 : index
    %48 = vector.load %arg8[%c1_35, %c0_36, %c0_37] : memref<3x1x256xf32, #tpu.memory_space<vmem>>, vector<1x1x256xf32>
    %49 = vector.shape_cast %48 : vector<1x1x256xf32> to vector<1x256xf32>
    %50 = vector.broadcast %49 : vector<1x256xf32> to vector<8x256xf32>
    %51 = arith.addf %47, %50 : vector<8x256xf32>
    %52 = arith.addf %31, %51 : vector<8x256xf32>
    %53 = vector.extract_strided_slice %6 {offsets = [0, 512], sizes = [8, 256], strides = [1, 1]} : vector<8x768xf32> to vector<8x256xf32>
    %54 = arith.addf %52, %53 : vector<8x256xf32>
    %cst_38 = arith.constant 0.000000e+00 : f32
    %55 = vector.broadcast %cst_38 : f32 to vector<8x256xf32>
    %56 = arith.maximumf %54, %55 : vector<8x256xf32>
    %57 = arith.truncf %56 : vector<8x256xf32> to vector<8x256xbf16>
    %c2 = arith.constant 2 : index
    %c0_39 = arith.constant 0 : index
    %c0_40 = arith.constant 0 : index
    %58 = vector.load %arg5[%c2, %c0_39, %c0_40] : memref<3x256x256xbf16, #tpu.memory_space<vmem>>, vector<1x256x256xbf16>
    %59 = vector.shape_cast %58 : vector<1x256x256xbf16> to vector<256x256xbf16>
    %cst_41 = arith.constant dense<0.000000e+00> : vector<8x256xf32>
    %60 = tpu.matmul %57, %59, %cst_41 {dimension_numbers = #tpu.dot_dimension_numbers<[1], [0], [0], [1], [0, 0, 1, 1], [], []>} : vector<8x256xbf16>, vector<256x256xbf16>, vector<8x256xf32> -> vector<8x256xf32>
    %c2_42 = arith.constant 2 : index
    %c0_43 = arith.constant 0 : index
    %c0_44 = arith.constant 0 : index
    %61 = vector.load %arg6[%c2_42, %c0_43, %c0_44] : memref<3x1x256xf32, #tpu.memory_space<vmem>>, vector<1x1x256xf32>
    %62 = vector.shape_cast %61 : vector<1x1x256xf32> to vector<1x256xf32>
    %63 = vector.broadcast %62 : vector<1x256xf32> to vector<8x256xf32>
    %64 = arith.addf %60, %63 : vector<8x256xf32>
    %cst_45 = arith.constant 0.000000e+00 : f32
    %65 = vector.broadcast %cst_45 : f32 to vector<8x256xf32>
    %66 = arith.maximumf %64, %65 : vector<8x256xf32>
    %67 = arith.truncf %66 : vector<8x256xf32> to vector<8x256xbf16>
    %c2_46 = arith.constant 2 : index
    %c0_47 = arith.constant 0 : index
    %c0_48 = arith.constant 0 : index
    %68 = vector.load %arg7[%c2_46, %c0_47, %c0_48] : memref<3x256x256xbf16, #tpu.memory_space<vmem>>, vector<1x256x256xbf16>
    %69 = vector.shape_cast %68 : vector<1x256x256xbf16> to vector<256x256xbf16>
    %cst_49 = arith.constant dense<0.000000e+00> : vector<8x256xf32>
    %70 = tpu.matmul %67, %69, %cst_49 {dimension_numbers = #tpu.dot_dimension_numbers<[1], [0], [0], [1], [0, 0, 1, 1], [], []>} : vector<8x256xbf16>, vector<256x256xbf16>, vector<8x256xf32> -> vector<8x256xf32>
    %c2_50 = arith.constant 2 : index
    %c0_51 = arith.constant 0 : index
    %c0_52 = arith.constant 0 : index
    %71 = vector.load %arg8[%c2_50, %c0_51, %c0_52] : memref<3x1x256xf32, #tpu.memory_space<vmem>>, vector<1x1x256xf32>
    %72 = vector.shape_cast %71 : vector<1x1x256xf32> to vector<1x256xf32>
    %73 = vector.broadcast %72 : vector<1x256xf32> to vector<8x256xf32>
    %74 = arith.addf %70, %73 : vector<8x256xf32>
    %75 = arith.addf %54, %74 : vector<8x256xf32>
    %cst_53 = arith.constant 0.000000e+00 : f32
    %76 = vector.broadcast %cst_53 : f32 to vector<8x256xf32>
    %77 = arith.maximumf %75, %76 : vector<8x256xf32>
    %78 = arith.truncf %77 : vector<8x256xf32> to vector<8x256xbf16>
    %c0_54 = arith.constant 0 : index
    %c0_55 = arith.constant 0 : index
    %79 = vector.load %arg9[%c0_54, %c0_55] : memref<256x8xbf16, #tpu.memory_space<vmem>>, vector<256x8xbf16>
    %cst_56 = arith.constant dense<0.000000e+00> : vector<8x8xf32>
    %80 = tpu.matmul %78, %79, %cst_56 {dimension_numbers = #tpu.dot_dimension_numbers<[1], [0], [0], [1], [0, 0, 1, 1], [], []>} : vector<8x256xbf16>, vector<256x8xbf16>, vector<8x8xf32> -> vector<8x8xf32>
    %c0_57 = arith.constant 0 : index
    %c0_58 = arith.constant 0 : index
    %81 = memref.load %arg10[%c0_57, %c0_58] : memref<1x1xf32, #tpu.memory_space<smem>>
    %82 = vector.broadcast %81 : f32 to vector<8x8xf32>
    %83 = arith.addf %80, %82 : vector<8x8xf32>
    %c0_59 = arith.constant 0 : index
    %c0_60 = arith.constant 0 : index
    %84 = vector.load %arg11[%c0_59, %c0_60] : memref<8x8xf32, #tpu.memory_space<vmem>>, vector<8x8xf32>
    tpu.vector_store %arg11[%c0_59, %c0_60], %83 {strides = array<i32>} : memref<8x8xf32, #tpu.memory_space<vmem>>, vector<8x8xf32>,
    return
  }
  func.func @transform_0(%arg0: i32) -> (i32, i32) {
    %c0_i32 = arith.constant 0 : i32
    %c0_i32_0 = arith.constant 0 : i32
    return %arg0, %c0_i32 : i32, i32
  }
  func.func @transform_1(%arg0: i32) -> (i32, i32) {
    %c0_i32 = arith.constant 0 : i32
    %c0_i32_0 = arith.constant 0 : i32
    return %arg0, %c0_i32 : i32, i32
  }
  func.func @transform_2(%arg0: i32) -> (i32, i32) {
    %c0_i32 = arith.constant 0 : i32
    %c0_i32_0 = arith.constant 0 : i32
    %c0_i32_1 = arith.constant 0 : i32
    return %c0_i32, %c0_i32_0 : i32, i32
  }
  func.func @transform_3(%arg0: i32) -> (i32, i32) {
    %c0_i32 = arith.constant 0 : i32
    %c0_i32_0 = arith.constant 0 : i32
    %c0_i32_1 = arith.constant 0 : i32
    return %c0_i32, %c0_i32_0 : i32, i32
  }
  func.func @transform_4(%arg0: i32) -> (i32, i32, i32) {
    %c0_i32 = arith.constant 0 : i32
    %c0_i32_0 = arith.constant 0 : i32
    %c0_i32_1 = arith.constant 0 : i32
    %c0_i32_2 = arith.constant 0 : i32
    return %c0_i32, %c0_i32_0, %c0_i32_1 : i32, i32, i32
  }
  func.func @transform_5(%arg0: i32) -> (i32, i32, i32) {
    %c0_i32 = arith.constant 0 : i32
    %c0_i32_0 = arith.constant 0 : i32
    %c0_i32_1 = arith.constant 0 : i32
    %c0_i32_2 = arith.constant 0 : i32
    return %c0_i32, %c0_i32_0, %c0_i32_1 : i32, i32, i32
  }
  func.func @transform_6(%arg0: i32) -> (i32, i32, i32) {
    %c0_i32 = arith.constant 0 : i32
    %c0_i32_0 = arith.constant 0 : i32
    %c0_i32_1 = arith.constant 0 : i32
    %c0_i32_2 = arith.constant 0 : i32
    return %c0_i32, %c0_i32_0, %c0_i32_1 : i32, i32, i32
  }
  func.func @transform_7(%arg0: i32) -> (i32, i32, i32) {
    %c0_i32 = arith.constant 0 : i32
    %c0_i32_0 = arith.constant 0 : i32
    %c0_i32_1 = arith.constant 0 : i32
    %c0_i32_2 = arith.constant 0 : i32
    return %c0_i32, %c0_i32_0, %c0_i32_1 : i32, i32, i32
  }
  func.func @transform_8(%arg0: i32) -> (i32, i32) {
    %c0_i32 = arith.constant 0 : i32
    %c0_i32_0 = arith.constant 0 : i32
    %c0_i32_1 = arith.constant 0 : i32
    return %c0_i32, %c0_i32_0 : i32, i32
  }
  func.func @transform_9(%arg0: i32) -> (i32, i32) {
    %c0_i32 = arith.constant 0 : i32
    %c0_i32_0 = arith.constant 0 : i32
    %c0_i32_1 = arith.constant 0 : i32
    return %c0_i32, %c0_i32_0 : i32, i32
  }
  func.func @transform_10(%arg0: i32) -> (i32, i32) {
    %c0_i32 = arith.constant 0 : i32
    %c0_i32_0 = arith.constant 0 : i32
    return %arg0, %c0_i32 : i32, i32
  }
}

</mosaic_0001>

<bundles_post_ra>
// kernel: tpu_custom_call.1
= control target key start
LH: loop header
LB: loop body
LE: loop exit
PB: predicated region body
PF: predicated region fallthrough
CT: control target
= control target key end

     0   :  { %s4201_s0 = inlined_call_operand.vmem [shape: f32[16,256], index: 0, kind: input, shape index: {}]   ;;  %s4202_s1 = inlined_call_operand.vmem [shape: bf16[16,256], index: 1, kind: input, shape index: {}]   ;;  %s4203_s2 = inlined_call_operand.hbm [shape: bf16[256,768], index: 2, kind: input, shape index: {}]   ;;  %s4204_s3 = inlined_call_operand.vmem [shape: f32[1,768], index: 3, kind: input, shape index: {}]   ;;  %s4205_s4 = inlined_call_operand.hbm [shape: bf16[3,256,256], index: 4, kind: input, shape index: {}]   ;;  %s4206_s5 = inlined_call_operand.vmem [shape: f32[3,1,256], index: 5, kind: input, shape index: {}]   ;;  %s4207_s6 = inlined_call_operand.hbm [shape: bf16[3,256,256], index: 6, kind: input, shape index: {}]   ;;  %s4208_s7 = inlined_call_operand.vmem [shape: f32[3,1,256], index: 7, kind: input, shape index: {}]   ;;  %s4209_s8 = inlined_call_operand.vmem [shape: bf16[256,8], index: 8, kind: input, shape index: {}]   ;;  %s4210_s9 = inlined_call_operand.<no memory space> [shape: f32[1,1], index: 9, kind: input, shape index: {}]   ;;  %s4211_s10 = inlined_call_operand.vmem [shape: f32[16,8], index: 10, kind: output, shape index: {}]  }
   0x1   :  { %15 = sst [smem:[#allocation2]] %s4210_s9 }
   0x2   :  { %16 = vsyncpa [#allocation4], 0 }
   0x3   :  { %17 = vsyncpa [#allocation6], 0  ;;  %s3955_s15 = smov 0  }
   0x4 LB: > { %s3890_s16 = smov [#allocation5]   ;;  %s3961_s18 = sadd.s32 4294967295, %s3888_s15   ;;  %s3888_s15 = sphi %s3955_s15, %s23_s15  }
   0x5   : > { %s302_s17 = sshll.u32 %s3890_s16, 4  ;;  %p2953_p0 = scmp.ge.s32.totalorder %s3888_s15, 1  ;;  %s303_s17 = int_to_ptr.vmem [resolvable:$true] %s302_s17 }
   0x6   : > { %p274_p1 = scmp.lt.s32.totalorder %s3888_s15, 3  ;;  %p3325_p2 = scmp.eq.s32.totalorder %s3961_s18, 0 }
   0x7   : > { %s3891_s19 = smov [#allocation3]   ;;  %s3892_s22 = smov [#allocation7]  }
   0x8   : > { %p3966_p3 = pnand %p2953_p0, %p274_p1  ;;  %s286_s20 = sshll.u32 %s3891_s19, 4  ;;  %s3972_s20 = int_to_ptr.vmem [resolvable:$true] %s286_s20 }
   0x9   : > { %s3980_s23 = sshll.u32 %s3892_s22, 4  ;;  %s3807_s24 = scalar_lea.vmem %s303_s17, 12288  ;;  %s319_s23 = int_to_ptr.vmem [resolvable:$true] %s3980_s23 }
   0xa   : > { %p3315_p4 = pneg %p3966_p3  ;;  %p3808_p7 = scmp.ne.s32.totalorder %s303_s17, %s3807_s24 }
   0xb   : > { %p3815_p10 = scmp.lt.s32.totalorder %s303_s17, %s303_s17  ;;  %p3816_p11 = scmp.lt.s32.totalorder %s3807_s24, %s3807_s24 }
   0xc   : > { %p3976_p5 = pnand %p3325_p2, %p3315_p4 }
   0xd   : > { %p3817_p12 = por %p3816_p11, %p3815_p10 }
   0xe   : > { %p3798_p6 = pneg %p3976_p5 }
  0x10   : > { %p3810_p8 = pnand %p3808_p7, %p3798_p6 }
  0x12   : > { %p3811_p9 = pneg %p3810_p8 }
  0x14   : > { %p3818_p13 = pnand %p3817_p12, %p3811_p9 }
  0x16   : > { %3821 = shalt.err (!%p3818_p13)
}
  0x17   : > { %s3893_s25 = smov 128   ;;  %s3894_s26 = smov 8  }
  0x18   : > { %3321 = dma.hbm_to_vmem [thread:$0]  (!%p3976_p5), %s4205_s4, 12288, %s303_s17, [#allocation6], %s3893_s25, %s3893_s25, %s3894_s26  }
  0x19   : > { %s3833_s29 = scalar_lea.vmem %s3972_s20, 12288  ;;  %p3841_p7 = scmp.lt.s32.totalorder %s3972_s20, %s3972_s20 }
  0x1a   : > { %p3834_p0 = scmp.ne.s32.totalorder %s3972_s20, %s3833_s29  ;;  %p3842_p8 = scmp.lt.s32.totalorder %s3833_s29, %s3833_s29 }
  0x1c   : > { %p3836_p1 = pnand %p3834_p0, %p3798_p6  ;;  %p3843_p9 = por %p3842_p8, %p3841_p7 }
  0x1e   : > { %p3837_p4 = pneg %p3836_p1 }
  0x20   : > { %p3844_p10 = pnand %p3843_p9, %p3837_p4 }
  0x22   : > { %3847 = shalt.err (!%p3844_p10)
}
  0x23   : > { %s3895_s30 = smov 384   ;;  %s3896_s11 = smov 24  }
  0x24   : > { %3318 = dma.hbm_to_vmem [thread:$0]  (!%p3976_p5), %s4203_s2, 12288, %s3972_s20, [#allocation4], %s3895_s30, %s3895_s30, %s3896_s11  }
  0x25   : > { %s3859_s14 = scalar_lea.vmem %s319_s23, 12288  ;;  %p3867_p0 = scmp.lt.s32.totalorder %s319_s23, %s319_s23 }
  0x26   : > { %p3860_p11 = scmp.ne.s32.totalorder %s319_s23, %s3859_s14  ;;  %p3868_p1 = scmp.lt.s32.totalorder %s3859_s14, %s3859_s14 }
  0x28   : > { %p3862_p12 = pnand %p3860_p11, %p3798_p6  ;;  %p3869_p4 = por %p3868_p1, %p3867_p0 }
  0x2a   : > { %p3863_p13 = pneg %p3862_p12 }
  0x2c   : > { %p3870_p7 = pnand %p3869_p4, %p3863_p13 }
  0x2e   : > { %3873 = shalt.err (!%p3870_p7)
}
  0x2f   : > { %3324 = dma.hbm_to_vmem [thread:$0]  (!%p3976_p5), %s4207_s6, 12288, %s319_s23, [#allocation6], %s3893_s25, %s3893_s25, %s3894_s26  }
  0x30   : > { %359 = sbr.rel (%p3966_p3) target bundleno = 1747 (0x6d3), region = 60 }
  0x35   : > { %3879 = dma.done.wait (%p3325_p2), [#allocation4], 12288  }
  0x36   : > { %3881 = vsyncadd (%p3325_p2), [#allocation4], 4294955008 }
  0x37   : > { %3883 = dma.done.wait (%p3325_p2), [#allocation6], 24576  }
  0x38   : > { %3885 = vsyncadd (%p3325_p2), [#allocation6], 4294942720  ;;  %v3346_v0 = vld [vmem:[#allocation3 + $0x154] ss:$24 sps:$4 sm:$0xff]   ;;  %v3348_v1 = vld [vmem:[#allocation3 + $0x150] ss:$24 sps:$4 sm:$0xff]  }
  0x39   : > { %1042 = vmatprep.subr.bf16.mxu0 %v3346_v0  ;;  %v3349_v2 = vld [vmem:[#allocation3 + $0x124] ss:$24 sps:$4 sm:$0xff]   ;;  %v3351_v3 = vld [vmem:[#allocation3 + $0x120] ss:$24 sps:$4 sm:$0xff]   ;;  %v3352_v4 = vld [vmem:[#allocation3 + $0xf4] ss:$24 sps:$4 sm:$0xff]  }
  0x3a   : > { %1043 = vmatpush1.bf16.msra.mxu0 %v3348_v1  ;;  %v3354_v5 = vld [vmem:[#allocation3 + $0xf0] ss:$24 sps:$4 sm:$0xff]   ;;  %p409_p3 = scmp.lt.s32.totalorder %s3961_s18, 1  ;;  %v3355_v6 = vld [vmem:[#allocation3 + $0xc4] ss:$24 sps:$4 sm:$0xff]   ;;  %s2715_s17 = sld [smem:[#allocation2]] }
  0x3b   : > { %1044 = vmatprep.subr.bf16.mxu0 %v3349_v2  ;;  %v3357_v7 = vld [vmem:[#allocation3 + $0xc0] ss:$24 sps:$4 sm:$0xff]   ;;  %v3358_v8 = vld [vmem:[#allocation3 + $0x94] ss:$24 sps:$4 sm:$0xff]   ;;  %v3360_v9 = vld [vmem:[#allocation3 + $0x90] ss:$24 sps:$4 sm:$0xff]  }
  0x3c   : > { %s4215_s18 = smov (!%p409_p3, %s3961_s18), 1  ;;  %v3361_v10 = vld [vmem:[#allocation3 + $0x64] ss:$24 sps:$4 sm:$0xff]   ;;  %v3363_v11 = vld [vmem:[#allocation3 + $0x60] ss:$24 sps:$4 sm:$0xff]   ;;  %vm2853_vm0 = vcmask 64512  }
  0x3d   : > { %s3280_s9 = sshll.u32 %s4215_s18, 3  ;;  %v3364_v12 = vld [vmem:[#allocation3 + $0x34] ss:$24 sps:$4 sm:$0xff]   ;;  %v3366_v13 = vld [vmem:[#allocation3 + $0x30] ss:$24 sps:$4 sm:$0xff]   ;;  %s3279_s22 = sshll.u32 %s4215_s18, 4 }
  0x3e   : > { %1045 = vmatpush1.bf16.msra.mxu0 %v3351_v3  ;;  %s418_s21 = scalar_lea.vmem %s4202_s1, %s3280_s9  ;;  %v3396_v16 = vld [vmem:[#allocation3 + $0x15c] ss:$24 sps:$4 sm:$0xff]   ;;  %v3398_v17 = vld [vmem:[#allocation3 + $0x158] ss:$24 sps:$4 sm:$0xff]   ;;  %v3399_v18 = vld [vmem:[#allocation3 + $0x12c] ss:$24 sps:$4 sm:$0xff]   ;;  %s413_s27 = scalar_lea.vmem %s4201_s0, %s3279_s22 }
  0x3f   : > { %1046 = vmatprep.subr.bf16.mxu0 %v3352_v4  ;;  %v4034_v14 = vld [vmem:[%s418_s21] sm:$0xff]  ;;  %1083 = vmatprep.subr.bf16.mxu1 %v3396_v16  ;;  %v3402_v22 = vld [vmem:[#allocation3 + $0xfc] ss:$24 sps:$4 sm:$0xff]   ;;  %v3372_v24 = vld [vmem:[#allocation3 + $0x2d0] ss:$24 sps:$4 sm:$0xff]   ;;  %s422_s21 = scalar_lea.vmem %s4211_s10, %s3280_s9 }
  0x40   : > { %v4038_v15 = vcombine.high %v4034_v14, %v4034_v14  ;;  %v3367_v19 = vld [vmem:[#allocation3 + $0x4] ss:$24 sps:$4 sm:$0xff]   ;;  %v3369_v20 = vld [vmem:[#allocation3] ss:$24 sps:$4 sm:$0xff]   ;;  %1084 = vmatpush1.bf16.msra.mxu1 %v3398_v17  ;;  %v3370_v23 = vld [vmem:[#allocation3 + $0x2d4] ss:$24 sps:$4 sm:$0xff]   ;;  %v4044_v57 = vcombine.low %v4034_v14, %v4034_v14 }
  0x41   : > { %v3401_v21 = vld [vmem:[#allocation3 + $0x128] ss:$24 sps:$4 sm:$0xff]   ;;  %1085 = vmatprep.subr.bf16.mxu1 %v3399_v18  ;;  %v3404_v25 = vld [vmem:[#allocation3 + $0xf8] ss:$24 sps:$4 sm:$0xff]   ;;  %v3405_v26 = vld [vmem:[#allocation3 + $0xcc] ss:$24 sps:$4 sm:$0xff]  }
  0x42   : > { %1047 = vmatpush1.bf16.msra.mxu0 %v3354_v5  ;;  %1074 = vmatprep.mubr.bf16.mxu0 %v4038_v15  ;;  %v3373_v27 = vld [vmem:[#allocation3 + $0x2a4] ss:$24 sps:$4 sm:$0xff]   ;;  %v3375_v28 = vld [vmem:[#allocation3 + $0x2a0] ss:$24 sps:$4 sm:$0xff]   ;;  %v3376_v31 = vld [vmem:[#allocation3 + $0x274] ss:$24 sps:$4 sm:$0xff]  }
  0x43   : > { %1048 = vmatprep.subr.bf16.mxu0 %v3355_v6  ;;  %1115 = vmatprep.mubr.bf16.mxu1 %v4038_v15  ;;  %v3407_v29 = vld [vmem:[#allocation3 + $0xc8] ss:$24 sps:$4 sm:$0xff]   ;;  %v3408_v30 = vld [vmem:[#allocation3 + $0x9c] ss:$24 sps:$4 sm:$0xff]   ;;  %v3410_v33 = vld [vmem:[#allocation3 + $0x98] ss:$24 sps:$4 sm:$0xff]  }
  0x44   : > { %1086 = vmatpush1.bf16.msra.mxu1 %v3401_v21  ;;  %v3378_v32 = vld [vmem:[#allocation3 + $0x270] ss:$24 sps:$4 sm:$0xff]   ;;  %v3411_v34 = vld [vmem:[#allocation3 + $0x6c] ss:$24 sps:$4 sm:$0xff]   ;;  %v3381_v36 = vld [vmem:[#allocation3 + $0x240] ss:$24 sps:$4 sm:$0xff]  }
  0x45   : > { %1087 = vmatprep.subr.bf16.mxu1 %v3402_v22  ;;  %v3379_v35 = vld [vmem:[#allocation3 + $0x244] ss:$24 sps:$4 sm:$0xff]   ;;  %v3413_v37 = vld [vmem:[#allocation3 + $0x68] ss:$24 sps:$4 sm:$0xff]   ;;  %v3382_v39 = vld [vmem:[#allocation3 + $0x214] ss:$24 sps:$4 sm:$0xff]  }
  0x46   : > { %1049 = vmatpush1.bf16.msra.mxu0 %v3357_v7  ;;  %v3414_v38 = vld [vmem:[#allocation3 + $0x3c] ss:$24 sps:$4 sm:$0xff]   ;;  %v3384_v40 = vld [vmem:[#allocation3 + $0x210] ss:$24 sps:$4 sm:$0xff]   ;;  %v3417_v42 = vld [vmem:[#allocation3 + $0xc] ss:$24 sps:$4 sm:$0xff]  }
  0x47   : > { %1050 = vmatprep.subr.bf16.mxu0 %v3358_v8  ;;  %v3416_v41 = vld [vmem:[#allocation3 + $0x38] ss:$24 sps:$4 sm:$0xff]   ;;  %v3385_v43 = vld [vmem:[#allocation3 + $0x1e4] ss:$24 sps:$4 sm:$0xff]   ;;  %v3419_v45 = vld [vmem:[#allocation3 + $0x8] ss:$24 sps:$4 sm:$0xff]  }
  0x48   : > { %1088 = vmatpush1.bf16.msra.mxu1 %v3404_v25  ;;  %v3387_v44 = vld [vmem:[#allocation3 + $0x1e0] ss:$24 sps:$4 sm:$0xff]   ;;  %v3420_v46 = vld [vmem:[#allocation3 + $0x2dc] ss:$24 sps:$4 sm:$0xff]   ;;  %v3390_v48 = vld [vmem:[#allocation3 + $0x1b0] ss:$24 sps:$4 sm:$0xff]  }
  0x49   : > { %1089 = vmatprep.subr.bf16.mxu1 %v3405_v26  ;;  %v3388_v47 = vld [vmem:[#allocation3 + $0x1b4] ss:$24 sps:$4 sm:$0xff]   ;;  %v3422_v49 = vld [vmem:[#allocation3 + $0x2d8] ss:$24 sps:$4 sm:$0xff]   ;;  %v3391_v51 = vld [vmem:[#allocation3 + $0x184] ss:$24 sps:$4 sm:$0xff]  }
  0x4a   : > { %1051 = vmatpush1.bf16.msra.mxu0 %v3360_v9  ;;  %v3423_v50 = vld [vmem:[#allocation3 + $0x2ac] ss:$24 sps:$4 sm:$0xff]   ;;  %v3393_v52 = vld [vmem:[#allocation3 + $0x180] ss:$24 sps:$4 sm:$0xff]   ;;  %v3426_v54 = vld [vmem:[#allocation3 + $0x27c] ss:$24 sps:$4 sm:$0xff]  }
  0x4b   : > { %1052 = vmatprep.subr.bf16.mxu0 %v3361_v10  ;;  %v3425_v53 = vld [vmem:[#allocation3 + $0x2a8] ss:$24 sps:$4 sm:$0xff]   ;;  %v3428_v55 = vld [vmem:[#allocation3 + $0x278] ss:$24 sps:$4 sm:$0xff]   ;;  %v3429_v56 = vld [vmem:[#allocation3 + $0x24c] ss:$24 sps:$4 sm:$0xff]  }
  0x4c   : > { %1090 = vmatpush1.bf16.msra.mxu1 %v3407_v29  ;;  %v3431_v58 = vld [vmem:[#allocation3 + $0x248] ss:$24 sps:$4 sm:$0xff]   ;;  %v3432_v59 = vld [vmem:[#allocation3 + $0x21c] ss:$24 sps:$4 sm:$0xff]   ;;  %v3434_v60 = vld [vmem:[#allocation3 + $0x218] ss:$24 sps:$4 sm:$0xff]  }
  0x4d   : > { %1091 = vmatprep.subr.bf16.mxu1 %v3408_v30  ;;  %v3435_v61 = vld [vmem:[#allocation3 + $0x1ec] ss:$24 sps:$4 sm:$0xff]   ;;  %v3437_v62 = vld [vmem:[#allocation3 + $0x1e8] ss:$24 sps:$4 sm:$0xff]   ;;  %v3438_v63 = vld [vmem:[#allocation3 + $0x1bc] ss:$24 sps:$4 sm:$0xff]  }
  0x4e   : > { %1053 = vmatpush1.bf16.msra.mxu0 %v3363_v11  ;;  %v3440_v0 = vld [vmem:[#allocation3 + $0x1b8] ss:$24 sps:$4 sm:$0xff]   ;;  %v3441_v1 = vld [vmem:[#allocation3 + $0x18c] ss:$24 sps:$4 sm:$0xff]   ;;  %v3443_v2 = vld [vmem:[#allocation3 + $0x188] ss:$24 sps:$4 sm:$0xff]  }
  0x4f   : > { %1054 = vmatprep.subr.bf16.mxu0 %v3364_v12  ;;  %v3446_v3 = vld [vmem:[#allocation5 + $0x74] ss:$8 sps:$4 sm:$0xff]   ;;  %v3444_v4 = vld [vmem:[#allocation5 + $0x70] ss:$8 sps:$4 sm:$0xff]   ;;  %v3449_v5 = vld [vmem:[#allocation5 + $0x64] ss:$8 sps:$4 sm:$0xff]  }
  0x50   : > { %1092 = vmatpush1.bf16.msra.mxu1 %v3410_v33  ;;  %v3447_v6 = vld [vmem:[#allocation5 + $0x60] ss:$8 sps:$4 sm:$0xff]   ;;  %v3452_v7 = vld [vmem:[#allocation5 + $0x54] ss:$8 sps:$4 sm:$0xff]   ;;  %v3450_v8 = vld [vmem:[#allocation5 + $0x50] ss:$8 sps:$4 sm:$0xff]  }
  0x51   : > { %1093 = vmatprep.subr.bf16.mxu1 %v3411_v34  ;;  %v3455_v9 = vld [vmem:[#allocation5 + $0x44] ss:$8 sps:$4 sm:$0xff]   ;;  %v3453_v10 = vld [vmem:[#allocation5 + $0x40] ss:$8 sps:$4 sm:$0xff]   ;;  %v3458_v11 = vld [vmem:[#allocation5 + $0x34] ss:$8 sps:$4 sm:$0xff]  }
  0x52   : > { %1055 = vmatpush1.bf16.msra.mxu0 %v3366_v13  ;;  %v3456_v12 = vld [vmem:[#allocation5 + $0x30] ss:$8 sps:$4 sm:$0xff]   ;;  %v3461_v13 = vld [vmem:[#allocation5 + $0x24] ss:$8 sps:$4 sm:$0xff]   ;;  %v3459_v14 = vld [vmem:[#allocation5 + $0x20] ss:$8 sps:$4 sm:$0xff]  }
  0x53   : > { %1056 = vmatprep.subr.bf16.mxu0 %v3367_v19  ;;  %v3462_v16 = vld [vmem:[#allocation5 + $0x10] ss:$8 sps:$4 sm:$0xff]   ;;  %v3467_v17 = vld [vmem:[#allocation5 + $0x4] ss:$8 sps:$4 sm:$0xff]   ;;  %v3465_v18 = vld [vmem:[#allocation5] ss:$8 sps:$4 sm:$0xff]  }
  0x54   : > { %1094 = vmatpush1.bf16.msra.mxu1 %v3413_v37  ;;  %v3470_v19 = vld [vmem:[#allocation5 + $0xf4] ss:$8 sps:$4 sm:$0xff]   ;;  %v3473_v21 = vld [vmem:[#allocation5 + $0xe4] ss:$8 sps:$4 sm:$0xff]   ;;  %v3471_v22 = vld [vmem:[#allocation5 + $0xe0] ss:$8 sps:$4 sm:$0xff]  }
  0x55   : > { %1095 = vmatprep.subr.bf16.mxu1 %v3414_v38  ;;  %v3479_v25 = vld [vmem:[#allocation5 + $0xc4] ss:$8 sps:$4 sm:$0xff]   ;;  %v3477_v26 = vld [vmem:[#allocation5 + $0xc0] ss:$8 sps:$4 sm:$0xff]  }
  0x56   : > { %1057 = vmatpush1.bf16.msra.mxu0 %v3369_v20  ;;  %v3468_v20 = vld [vmem:[#allocation5 + $0xf0] ss:$8 sps:$4 sm:$0xff]   ;;  %v3485_v29 = vld [vmem:[#allocation5 + $0xa4] ss:$8 sps:$4 sm:$0xff]   ;;  %v3483_v30 = vld [vmem:[#allocation5 + $0xa0] ss:$8 sps:$4 sm:$0xff]  }
  0x57   : > { %1058 = vmatprep.subr.bf16.mxu0 %v3370_v23  ;;  %v3476_v23 = vld [vmem:[#allocation5 + $0xd4] ss:$8 sps:$4 sm:$0xff]   ;;  %v3492_v33 = vld [vmem:[#allocation3 + $0x160] ss:$24 sps:$4 sm:$0xff]   ;;  %v3495_v37 = vld [vmem:[#allocation3 + $0x130] ss:$24 sps:$4 sm:$0xff]  }
  0x58   : > { %1096 = vmatpush1.bf16.msra.mxu1 %v3416_v41  ;;  %v3494_v34 = vld [vmem:[#allocation3 + $0x164] ss:$24 sps:$4 sm:$0xff]   ;;  %v3489_v38 = vld [vmem:[#allocation5 + $0x80] ss:$8 sps:$4 sm:$0xff]   ;;  %v3503_v41 = vld [vmem:[#allocation3 + $0xd4] ss:$24 sps:$4 sm:$0xff]  }
  0x59   : > { %1097 = vmatprep.subr.bf16.mxu1 %v3417_v42  ;;  %v3501_v42 = vld [vmem:[#allocation3 + $0xd0] ss:$24 sps:$4 sm:$0xff]  }
  0x5a   : > { %1059 = vmatpush2.bf16.msra.mxu0 %v3372_v24  ;;  %v3474_v24 = vld [vmem:[#allocation5 + $0xd0] ss:$8 sps:$4 sm:$0xff]  }
  0x5b   : > { %1060 = vmatprep.subr.bf16.mxu0 %v3373_v27  ;;  %v3482_v27 = vld [vmem:[#allocation5 + $0xb4] ss:$8 sps:$4 sm:$0xff]  }
  0x5c   : > { %1098 = vmatpush1.bf16.msra.mxu1 %v3419_v45  ;;  %v3509_v45 = vld [vmem:[#allocation3 + $0x74] ss:$24 sps:$4 sm:$0xff]  }
  0x5d   : > { %1099 = vmatprep.subr.bf16.mxu1 %v3420_v46  ;;  %v3507_v46 = vld [vmem:[#allocation3 + $0x70] ss:$24 sps:$4 sm:$0xff]  }
  0x5e   : > { %1061 = vmatpush2.bf16.msra.mxu0 %v3375_v28  ;;  %v3480_v28 = vld [vmem:[#allocation5 + $0xb0] ss:$8 sps:$4 sm:$0xff]  }
  0x5f   : > { %1062 = vmatprep.subr.bf16.mxu0 %v3376_v31  ;;  %v3488_v31 = vld [vmem:[#allocation5 + $0x94] ss:$8 sps:$4 sm:$0xff]  }
  0x60   : > { %1100 = vmatpush2.bf16.msra.mxu1 %v3422_v49  ;;  %v3515_v49 = vld [vmem:[#allocation3 + $0x14] ss:$24 sps:$4 sm:$0xff]  }
  0x61   : > { %1101 = vmatprep.subr.bf16.mxu1 %v3423_v50  ;;  %v3513_v50 = vld [vmem:[#allocation3 + $0x10] ss:$24 sps:$4 sm:$0xff]  }
  0x62   : > { %1063 = vmatpush2.bf16.msra.mxu0 %v3378_v32  ;;  %v3486_v32 = vld [vmem:[#allocation5 + $0x90] ss:$8 sps:$4 sm:$0xff]  }
  0x63   : > { %1064 = vmatprep.subr.bf16.mxu0 %v3379_v35  ;;  %v3491_v35 = vld [vmem:[#allocation5 + $0x84] ss:$8 sps:$4 sm:$0xff]  }
  0x64   : > { %1102 = vmatpush2.bf16.msra.mxu1 %v3425_v53  ;;  %v3521_v53 = vld [vmem:[#allocation3 + $0x2b4] ss:$24 sps:$4 sm:$0xff]  }
  0x65   : > { %1103 = vmatprep.subr.bf16.mxu1 %v3426_v54  ;;  %v3519_v54 = vld [vmem:[#allocation3 + $0x2b0] ss:$24 sps:$4 sm:$0xff]  }
  0x66   : > { %1065 = vmatpush2.bf16.msra.mxu0 %v3381_v36  ;;  %v3497_v36 = vld [vmem:[#allocation3 + $0x134] ss:$24 sps:$4 sm:$0xff]  }
  0x67   : > { %1066 = vmatprep.subr.bf16.mxu0 %v3382_v39  ;;  %v3500_v39 = vld [vmem:[#allocation3 + $0x104] ss:$24 sps:$4 sm:$0xff]  }
  0x68   : > { %1104 = vmatpush2.bf16.msra.mxu1 %v3428_v55  ;;  %v3524_v55 = vld [vmem:[#allocation3 + $0x284] ss:$24 sps:$4 sm:$0xff]  }
  0x69   : > { %1105 = vmatprep.subr.bf16.mxu1 %v3429_v56  ;;  %v3522_v56 = vld [vmem:[#allocation3 + $0x280] ss:$24 sps:$4 sm:$0xff]  }
  0x6a   : > { %1067 = vmatpush2.bf16.msra.mxu0 %v3384_v40  ;;  %v3498_v40 = vld [vmem:[#allocation3 + $0x100] ss:$24 sps:$4 sm:$0xff]  }
  0x6b   : > { %1068 = vmatprep.subr.bf16.mxu0 %v3385_v43  ;;  %v3506_v43 = vld [vmem:[#allocation3 + $0xa4] ss:$24 sps:$4 sm:$0xff]  }
  0x6c   : > { %1106 = vmatpush2.bf16.msra.mxu1 %v3431_v58  ;;  %v3527_v58 = vld [vmem:[#allocation3 + $0x254] ss:$24 sps:$4 sm:$0xff]  }
  0x6d   : > { %1107 = vmatprep.subr.bf16.mxu1 %v3432_v59  ;;  %v3525_v59 = vld [vmem:[#allocation3 + $0x250] ss:$24 sps:$4 sm:$0xff]  }
  0x6e   : > { %1069 = vmatpush2.bf16.msra.mxu0 %v3387_v44  ;;  %v3504_v44 = vld [vmem:[#allocation3 + $0xa0] ss:$24 sps:$4 sm:$0xff]  }
  0x6f   : > { %1070 = vmatprep.subr.bf16.mxu0 %v3388_v47  ;;  %v3512_v47 = vld [vmem:[#allocation3 + $0x44] ss:$24 sps:$4 sm:$0xff]  }
  0x70   : > { %1108 = vmatpush2.bf16.msra.mxu1 %v3434_v60  ;;  %v3530_v60 = vld [vmem:[#allocation3 + $0x224] ss:$24 sps:$4 sm:$0xff]  }
  0x71   : > { %1109 = vmatprep.subr.bf16.mxu1 %v3435_v61  ;;  %v3528_v61 = vld [vmem:[#allocation3 + $0x220] ss:$24 sps:$4 sm:$0xff]  }
  0x72   : > { %1071 = vmatpush2.bf16.msra.mxu0 %v3390_v48  ;;  %v3510_v48 = vld [vmem:[#allocation3 + $0x40] ss:$24 sps:$4 sm:$0xff]  }
  0x73   : > { %1072 = vmatprep.subr.bf16.mxu0 %v3391_v51  ;;  %v3518_v51 = vld [vmem:[#allocation3 + $0x2e4] ss:$24 sps:$4 sm:$0xff]  }
  0x74   : > { %1110 = vmatpush2.bf16.msra.mxu1 %v3437_v62  ;;  %v3533_v62 = vld [vmem:[#allocation3 + $0x1f4] ss:$24 sps:$4 sm:$0xff]  }
  0x75   : > { %1111 = vmatprep.subr.bf16.mxu1 %v3438_v63  ;;  %v3531_v63 = vld [vmem:[#allocation3 + $0x1f0] ss:$24 sps:$4 sm:$0xff]  }
  0x76   : > { %1073 = vmatpush2.bf16.msra.mxu0 %v3393_v52  ;;  %v3516_v52 = vld [vmem:[#allocation3 + $0x2e0] ss:$24 sps:$4 sm:$0xff]  }
  0x77   : > { %1124 = vmatprep.subr.bf16.mxu0 %v3494_v34  ;;  %v3581_v34 = vld [vmem:[#allocation7 + $0xa4] ss:$8 sps:$4 sm:$0xff]  }
  0x78   : > { %1112 = vmatpush2.bf16.msra.mxu1 %v3440_v0  ;;  %v3536_v0 = vld [vmem:[#allocation3 + $0x1c4] ss:$24 sps:$4 sm:$0xff]  }
  0x79   : > { %1075 = vmatmul.mubr.bf16.vlgmr.msra.gmra.mxu0 %v4044_v57  ;;  %1113 = vmatprep.subr.bf16.mxu1 %v3441_v1  ;;  %v3534_v1 = vld [vmem:[#allocation3 + $0x1c0] ss:$24 sps:$4 sm:$0xff]  }
  0x7a   : > { %1156 = vmatprep.mubr.bf16.mxu0 %v4038_v15  ;;  %v3464_v15 = vld [vmem:[#allocation5 + $0x14] ss:$8 sps:$4 sm:$0xff]   ;;  %1125 = vmatpush1.bf16.msra.mxu0 %v3492_v33  ;;  %v3576_v33 = vld [vmem:[#allocation7 + $0xb0] ss:$8 sps:$4 sm:$0xff]  }
  0x7b   : > { %1126 = vmatprep.subr.bf16.mxu0 %v3497_v36 }
  0x7c   : > { %1114 = vmatpush2.bf16.msra.mxu1 %v3443_v2  ;;  %v3539_v2 = vld [vmem:[#allocation3 + $0x194] ss:$24 sps:$4 sm:$0xff]  }
  0x7d   : > { %1375 = vmatprep.subr.bf16.mxu1 %v3446_v3  ;;  %v3537_v3 = vld [vmem:[#allocation3 + $0x190] ss:$24 sps:$4 sm:$0xff]  }
  0x7e   : > { %1127 = vmatpush1.bf16.msra.mxu0 %v3495_v37  ;;  %v3579_v37 = vld [vmem:[#allocation7 + $0xa0] ss:$8 sps:$4 sm:$0xff]  }
  0x7f   : > { %1116 = vmatmul.mubr.bf16.vlgmr.msra.gmra.mxu1 %v4044_v57  ;;  %1128 = vmatprep.subr.bf16.mxu0 %v3500_v39 }
  0x80   : > { %1376 = vmatpush1.bf16.msra.mxu1 %v3444_v4  ;;  %v3542_v4 = vld [vmem:[#allocation7 + $0x74] ss:$8 sps:$4 sm:$0xff]  }
  0x81   : > { %1377 = vmatprep.subr.bf16.mxu1 %v3449_v5  ;;  %v3540_v5 = vld [vmem:[#allocation7 + $0x70] ss:$8 sps:$4 sm:$0xff]  }
  0x82   : > { %1129 = vmatpush1.bf16.msra.mxu0 %v3498_v40 }
  0x83   : > { %1130 = vmatprep.subr.bf16.mxu0 %v3503_v41  ;;  %v425_v41 = vld [vmem:[%s413_s27 + $0x8] sm:$0xff] }
  0x84   : > { %1378 = vmatpush1.bf16.msra.mxu1 %v3447_v6  ;;  %v3545_v6 = vld [vmem:[#allocation7 + $0x64] ss:$8 sps:$4 sm:$0xff]  }
  0x85   : > { %1379 = vmatprep.subr.bf16.mxu1 %v3452_v7  ;;  %v3543_v7 = vld [vmem:[#allocation7 + $0x60] ss:$8 sps:$4 sm:$0xff]  }
  0x86   : > { %1131 = vmatpush1.bf16.msra.mxu0 %v3501_v42 }
  0x87   : > { %1132 = vmatprep.subr.bf16.mxu0 %v3506_v43 }
  0x88   : > { %1380 = vmatpush1.bf16.msra.mxu1 %v3450_v8  ;;  %v3548_v8 = vld [vmem:[#allocation7 + $0x54] ss:$8 sps:$4 sm:$0xff]  }
  0x89   : > { %1381 = vmatprep.subr.bf16.mxu1 %v3455_v9  ;;  %v3546_v9 = vld [vmem:[#allocation7 + $0x50] ss:$8 sps:$4 sm:$0xff]  }
  0x8a   : > { %1133 = vmatpush1.bf16.msra.mxu0 %v3504_v44 }
  0x8b   : > { %1134 = vmatprep.subr.bf16.mxu0 %v3509_v45 }
  0x8c   : > { %1382 = vmatpush1.bf16.msra.mxu1 %v3453_v10  ;;  %v3551_v10 = vld [vmem:[#allocation7 + $0x44] ss:$8 sps:$4 sm:$0xff]  }
  0x8d   : > { %1383 = vmatprep.subr.bf16.mxu1 %v3458_v11  ;;  %v3549_v11 = vld [vmem:[#allocation7 + $0x40] ss:$8 sps:$4 sm:$0xff]  }
  0x8e   : > { %1135 = vmatpush1.bf16.msra.mxu0 %v3507_v46 }
  0x8f   : > { %1136 = vmatprep.subr.bf16.mxu0 %v3512_v47 }
  0x90   : > { %1384 = vmatpush1.bf16.msra.mxu1 %v3456_v12  ;;  %v3554_v12 = vld [vmem:[#allocation7 + $0x34] ss:$8 sps:$4 sm:$0xff]  }
  0x91   : > { %1385 = vmatprep.subr.bf16.mxu1 %v3461_v13  ;;  %v3552_v13 = vld [vmem:[#allocation7 + $0x30] ss:$8 sps:$4 sm:$0xff]  }
  0x92   : > { %1137 = vmatpush1.bf16.msra.mxu0 %v3510_v48 }
  0x93   : > { %1138 = vmatprep.subr.bf16.mxu0 %v3515_v49 }
  0x94   : > { %1386 = vmatpush1.bf16.msra.mxu1 %v3459_v14  ;;  %v3557_v14 = vld [vmem:[#allocation7 + $0x24] ss:$8 sps:$4 sm:$0xff]  }
  0x95   : > { %1387 = vmatprep.subr.bf16.mxu1 %v3464_v15  ;;  %v3555_v15 = vld [vmem:[#allocation7 + $0x20] ss:$8 sps:$4 sm:$0xff]  }
  0x96   : > { %1139 = vmatpush1.bf16.msra.mxu0 %v3513_v50 }
  0x97   : > { %1140 = vmatprep.subr.bf16.mxu0 %v3518_v51 }
  0x98   : > { %1388 = vmatpush1.bf16.msra.mxu1 %v3462_v16  ;;  %v3558_v16 = vld [vmem:[#allocation7 + $0x10] ss:$8 sps:$4 sm:$0xff]  }
  0x99   : > { %1389 = vmatprep.subr.bf16.mxu1 %v3467_v17  ;;  %v3563_v17 = vld [vmem:[#allocation7 + $0x4] ss:$8 sps:$4 sm:$0xff]  }
  0x9a   : > { %1141 = vmatpush2.bf16.msra.mxu0 %v3516_v52 }
  0x9b   : > { %1142 = vmatprep.subr.bf16.mxu0 %v3521_v53 }
  0x9c   : > { %1390 = vmatpush1.bf16.msra.mxu1 %v3465_v18  ;;  %v3561_v18 = vld [vmem:[#allocation7] ss:$8 sps:$4 sm:$0xff]  }
  0x9d   : > { %1391 = vmatprep.subr.bf16.mxu1 %v3470_v19  ;;  %v3566_v19 = vld [vmem:[#allocation7 + $0xf4] ss:$8 sps:$4 sm:$0xff]  }
  0x9e   : > { %1143 = vmatpush2.bf16.msra.mxu0 %v3519_v54 }
  0x9f   : > { %1144 = vmatprep.subr.bf16.mxu0 %v3524_v55 }
  0xa0   : > { %1392 = vmatpush2.bf16.msra.mxu1 %v3468_v20  ;;  %v3564_v20 = vld [vmem:[#allocation7 + $0xf0] ss:$8 sps:$4 sm:$0xff]  }
  0xa1   : > { %1393 = vmatprep.subr.bf16.mxu1 %v3473_v21  ;;  %v3569_v21 = vld [vmem:[#allocation7 + $0xe4] ss:$8 sps:$4 sm:$0xff]  }
  0xa2   : > { %1145 = vmatpush2.bf16.msra.mxu0 %v3522_v56  ;;  %v3584_v56 = vld [vmem:[#allocation7 + $0x94] ss:$8 sps:$4 sm:$0xff]  }
  0xa3   : > { %1146 = vmatprep.subr.bf16.mxu0 %v3527_v58  ;;  %v3582_v58 = vld [vmem:[#allocation7 + $0x90] ss:$8 sps:$4 sm:$0xff]  }
  0xa4   : > { %1394 = vmatpush2.bf16.msra.mxu1 %v3471_v22  ;;  %v3567_v22 = vld [vmem:[#allocation7 + $0xe0] ss:$8 sps:$4 sm:$0xff]  }
  0xa5   : > { %1395 = vmatprep.subr.bf16.mxu1 %v3476_v23  ;;  %v3572_v23 = vld [vmem:[#allocation7 + $0xd4] ss:$8 sps:$4 sm:$0xff]  }
  0xa6   : > { %1147 = vmatpush2.bf16.msra.mxu0 %v3525_v59  ;;  %v3587_v59 = vld [vmem:[#allocation7 + $0x84] ss:$8 sps:$4 sm:$0xff]  }
  0xa7   : > { %1148 = vmatprep.subr.bf16.mxu0 %v3530_v60  ;;  %v3585_v60 = vld [vmem:[#allocation7 + $0x80] ss:$8 sps:$4 sm:$0xff]  }
  0xa8   : > { %1396 = vmatpush2.bf16.msra.mxu1 %v3474_v24  ;;  %v525_v24 = vlaneseq }
  0xa9   : > { %1397 = vmatprep.subr.bf16.mxu1 %v3479_v25  ;;  %v3570_v25 = vld [vmem:[#allocation7 + $0xd0] ss:$8 sps:$4 sm:$0xff]  }
  0xaa   : > { %1149 = vmatpush2.bf16.msra.mxu0 %v3528_v61  ;;  %v3588_v61 = vld [vmem:[#allocation5 + $0x170] ss:$8 sps:$4 sm:$0xff]  }
  0xab   : > { %1150 = vmatprep.subr.bf16.mxu0 %v3533_v62  ;;  %v3590_v62 = vld [vmem:[#allocation5 + $0x174] ss:$8 sps:$4 sm:$0xff]  }
  0xac   : > { %1398 = vmatpush2.bf16.msra.mxu1 %v3477_v26  ;;  %v3575_v26 = vld [vmem:[#allocation7 + $0xc4] ss:$8 sps:$4 sm:$0xff]  }
  0xad   : > { %1399 = vmatprep.subr.bf16.mxu1 %v3482_v27  ;;  %v4050_v27 = vshrl.u32 %v525_v24, 7 }
  0xae   : > { %1151 = vmatpush2.bf16.msra.mxu0 %v3531_v63  ;;  %v3593_v63 = vld [vmem:[#allocation5 + $0x164] ss:$8 sps:$4 sm:$0xff]  }
  0xaf   : > { %1152 = vmatprep.subr.bf16.mxu0 %v3536_v0  ;;  %v3591_v0 = vld [vmem:[#allocation5 + $0x160] ss:$8 sps:$4 sm:$0xff]  }
  0xb0   : > { %1400 = vmatpush2.bf16.msra.mxu1 %v3480_v28  ;;  %v3573_v28 = vld [vmem:[#allocation7 + $0xc0] ss:$8 sps:$4 sm:$0xff]  }
  0xb1   : > { %1401 = vmatprep.subr.bf16.mxu1 %v3485_v29  ;;  %v3578_v29 = vld [vmem:[#allocation7 + $0xb4] ss:$8 sps:$4 sm:$0xff]  }
  0xb2   : > { %1153 = vmatpush2.bf16.msra.mxu0 %v3534_v1  ;;  %v3596_v1 = vld [vmem:[#allocation5 + $0x154] ss:$8 sps:$4 sm:$0xff]  }
  0xb3   : > { %1154 = vmatprep.subr.bf16.mxu0 %v3539_v2  ;;  %v3594_v2 = vld [vmem:[#allocation5 + $0x150] ss:$8 sps:$4 sm:$0xff]  }
  0xb4   : > { %1402 = vmatpush2.bf16.msra.mxu1 %v3483_v30  ;;  %v4053_v30 = vsub.s32 0, %v4050_v27 }
  0xb5   : > { %1403 = vmatprep.subr.bf16.mxu1 %v3488_v31  ;;  %v4059_v31 = vld [vmem:[%s4204_s3] sm:$0x3f] }
  0xb6   : > { %1155 = vmatpush2.bf16.msra.mxu0 %v3537_v3  ;;  %v3599_v3 = vld [vmem:[#allocation5 + $0x144] ss:$8 sps:$4 sm:$0xff]  }
  0xb7   : > { %1624 = vmatprep.subr.bf16.mxu0 %v3542_v4  ;;  %v3597_v4 = vld [vmem:[#allocation5 + $0x140] ss:$8 sps:$4 sm:$0xff]  }
  0xb8   : > { %1404 = vmatpush2.bf16.msra.mxu1 %v3486_v32  ;;  %v4062_v32 = vsub.s32 1, %v4050_v27 }
  0xb9   : > { %1405 = vmatprep.subr.bf16.mxu1 %v3491_v35  ;;  %1157 = vmatmul.mubr.bf16.vlgmr.msra.gmra.mxu0 %v4044_v57  ;;  %v3560_v57 = vld [vmem:[#allocation7 + $0x14] ss:$8 sps:$4 sm:$0xff]   ;;  %v528_v35 = vrot.slane %v4059_v31, %v4053_v30 }
  0xba   : > { %1625 = vmatpush1.bf16.msra.mxu0 %v3540_v5  ;;  %v532_v36 = vrot.slane %v4059_v31, %v4062_v32  ;;  %v3602_v5 = vld [vmem:[#allocation5 + $0x134] ss:$8 sps:$4 sm:$0xff]  }
  0xbb   : > { %1626 = vmatprep.subr.bf16.mxu0 %v3545_v6  ;;  %v3600_v6 = vld [vmem:[#allocation5 + $0x130] ss:$8 sps:$4 sm:$0xff]  }
  0xbc   : > { %1406 = vmatpush2.bf16.msra.mxu1 %v3489_v38  ;;  %v424_v38 = vld [vmem:[%s413_s27] sm:$0xff] }
  0xbd   : > { %1879 = vmatprep.subr.bf16.mxu1 %v3590_v62  ;;  %v3650_v62 = vld [vmem:[#allocation7 + $0x134] ss:$8 sps:$4 sm:$0xff]  }
  0xbe   : > { %1627 = vmatpush1.bf16.msra.mxu0 %v3543_v7  ;;  %v3605_v7 = vld [vmem:[#allocation5 + $0x124] ss:$8 sps:$4 sm:$0xff]  }
  0xbf   : > { %1628 = vmatprep.subr.bf16.mxu0 %v3548_v8  ;;  %v3603_v8 = vld [vmem:[#allocation5 + $0x120] ss:$8 sps:$4 sm:$0xff]  }
  0xc2   : > { %1629 = vmatpush1.bf16.msra.mxu0 %v3546_v9  ;;  %v3608_v9 = vld [vmem:[#allocation5 + $0x114] ss:$8 sps:$4 sm:$0xff]  }
  0xc3   : > { %1630 = vmatprep.subr.bf16.mxu0 %v3551_v10  ;;  %v3606_v10 = vld [vmem:[#allocation5 + $0x110] ss:$8 sps:$4 sm:$0xff]  }
  0xc6   : > { %1631 = vmatpush1.bf16.msra.mxu0 %v3549_v11  ;;  %v3611_v11 = vld [vmem:[#allocation5 + $0x104] ss:$8 sps:$4 sm:$0xff]  }
  0xc7   : > { %1632 = vmatprep.subr.bf16.mxu0 %v3554_v12  ;;  %v3609_v12 = vld [vmem:[#allocation5 + $0x100] ss:$8 sps:$4 sm:$0xff]  }
  0xca   : > { %1633 = vmatpush1.bf16.msra.mxu0 %v3552_v13  ;;  %v3614_v13 = vld [vmem:[#allocation5 + $0x1f4] ss:$8 sps:$4 sm:$0xff]  }
  0xcb   : > { %1634 = vmatprep.subr.bf16.mxu0 %v3557_v14  ;;  %v3612_v14 = vld [vmem:[#allocation5 + $0x1f0] ss:$8 sps:$4 sm:$0xff]  }
  0xce   : > { %1635 = vmatpush1.bf16.msra.mxu0 %v3555_v15  ;;  %v3617_v15 = vld [vmem:[#allocation5 + $0x1e4] ss:$8 sps:$4 sm:$0xff]  }
  0xcf   : > { %1636 = vmatprep.subr.bf16.mxu0 %v3560_v57  ;;  %v3615_v57 = vld [vmem:[#allocation5 + $0x1e0] ss:$8 sps:$4 sm:$0xff]  }
  0xd2   : > { %1637 = vmatpush1.bf16.msra.mxu0 %v3558_v16  ;;  %v3620_v16 = vld [vmem:[#allocation5 + $0x1d4] ss:$8 sps:$4 sm:$0xff]  }
  0xd3   : > { %1638 = vmatprep.subr.bf16.mxu0 %v3563_v17  ;;  %v3618_v17 = vld [vmem:[#allocation5 + $0x1d0] ss:$8 sps:$4 sm:$0xff]  }
  0xd6   : > { %1639 = vmatpush1.bf16.msra.mxu0 %v3561_v18  ;;  %v3623_v18 = vld [vmem:[#allocation5 + $0x1c4] ss:$8 sps:$4 sm:$0xff]  }
  0xd7   : > { %1640 = vmatprep.subr.bf16.mxu0 %v3566_v19  ;;  %v3621_v19 = vld [vmem:[#allocation5 + $0x1c0] ss:$8 sps:$4 sm:$0xff]  }
  0xda   : > { %1641 = vmatpush2.bf16.msra.mxu0 %v3564_v20  ;;  %v3626_v20 = vld [vmem:[#allocation5 + $0x1b4] ss:$8 sps:$4 sm:$0xff]  }
  0xdb   : > { %1642 = vmatprep.subr.bf16.mxu0 %v3569_v21  ;;  %v3624_v21 = vld [vmem:[#allocation5 + $0x1b0] ss:$8 sps:$4 sm:$0xff]  }
  0xde   : > { %1643 = vmatpush2.bf16.msra.mxu0 %v3567_v22 }
  0xdf   : > { %1644 = vmatprep.subr.bf16.mxu0 %v3572_v23 }
  0xe2   : > { %1645 = vmatpush2.bf16.msra.mxu0 %v3570_v25 }
  0xe3   : > { %1646 = vmatprep.subr.bf16.mxu0 %v3575_v26  ;;  %v1203_v26 = vld [vmem:[%s4206_s5] sm:$0x3] }
  0xe6   : > { %1647 = vmatpush2.bf16.msra.mxu0 %v3573_v28  ;;  %v1208_v28 = vrot.slane %v1203_v26, %v4053_v30 }
  0xe7   : > { %1648 = vmatprep.subr.bf16.mxu0 %v3578_v29  ;;  %v1212_v29 = vrot.slane %v1203_v26, %v4062_v32 }
  0xea   : > { %1649 = vmatpush2.bf16.msra.mxu0 %v3576_v33 }
  0xeb   : > { %1650 = vmatprep.subr.bf16.mxu0 %v3581_v34 }
  0xee   : > { %1651 = vmatpush2.bf16.msra.mxu0 %v3579_v37 }
  0xef   : > { %1652 = vmatprep.subr.bf16.mxu0 %v3584_v56  ;;  %v3639_v56 = vld [vmem:[#allocation7 + $0x160] ss:$8 sps:$4 sm:$0xff]  }
  0xf2   : > { %1653 = vmatpush2.bf16.msra.mxu0 %v3582_v58  ;;  %v3644_v58 = vld [vmem:[#allocation7 + $0x154] ss:$8 sps:$4 sm:$0xff]  }
  0xf3   : > { %1654 = vmatprep.subr.bf16.mxu0 %v3587_v59  ;;  %v3642_v59 = vld [vmem:[#allocation7 + $0x150] ss:$8 sps:$4 sm:$0xff]  }
  0xf6   : > { %1655 = vmatpush2.bf16.msra.mxu0 %v3585_v60  ;;  %v3647_v60 = vld [vmem:[#allocation7 + $0x144] ss:$8 sps:$4 sm:$0xff]  }
 0x139   : > { %v1076_v39 = vpop.f32.mrf.mxu0 }
 0x13a   : > { %v1077_v40 = vadd.f32 %v1076_v39, %v528_v35 }
 0x13b   : > { %v1078_v42 = vpop.f32.mrf.mxu0 }
 0x13c   : > { %v4071_v43 = vadd.f32 %v1077_v40, %v424_v38  ;;  %v1079_v44 = vadd.f32 %v1078_v42, %v532_v36 }
 0x13d   : > { %v1080_v45 = vpop.f32.mrf.mxu0 }
 0x13e   : > { %v4073_v46 = vadd.f32 %v1079_v44, %v425_v41  ;;  %v1167_v47 = vmax.f32 %v4071_v43, 0.0  ;;  %v3629_v44 = vld [vmem:[#allocation5 + $0x1a4] ss:$8 sps:$4 sm:$0xff]   ;;  %v3627_v45 = vld [vmem:[#allocation5 + $0x1a0] ss:$8 sps:$4 sm:$0xff]  }
 0x13f   : > { %v1081_v48 = vpop.f32.mrf.mxu0  ;;  %v4077_v52 = vpop.f32.mrf.mxu1 }
 0x140   : > { %v1168_v49 = vmax.f32 %v4073_v46, 0.0  ;;  %v1169_v51 = vpack.c.bf16 %v1167_v47, %v1167_v47  ;;  %v3632_v47 = vld [vmem:[#allocation5 + $0x194] ss:$8 sps:$4 sm:$0xff]   ;;  %v3630_v48 = vld [vmem:[#allocation5 + $0x190] ss:$8 sps:$4 sm:$0xff]  }
 0x141   : > { %v4079_v53 = vpop.f32.mrf.mxu1 }
 0x142   : > { %v1170_v50 = vpack.c.bf16 %v1168_v49, %v1168_v49  ;;  %v3635_v49 = vld [vmem:[#allocation5 + $0x184] ss:$8 sps:$4 sm:$0xff]  }
 0x143   : > { %v1121_v54 = vpop.f32.mrf.mxu1 }
 0x144   : > { %1407 = vmatprep.mubr.bf16.mxu1 %v1170_v50  ;;  %v3633_v50 = vld [vmem:[#allocation5 + $0x180] ss:$8 sps:$4 sm:$0xff]   ;;  %v3638_v54 = vld [vmem:[#allocation7 + $0x174] ss:$8 sps:$4 sm:$0xff]  }
 0x145   : > { %1408 = vmatmul.mubr.bf16.vlgmr.msra.gmra.mxu1 %v1169_v51  ;;  %v1122_v55 = vpop.f32.mrf.mxu1  ;;  %v3636_v51 = vld [vmem:[#allocation7 + $0x170] ss:$8 sps:$4 sm:$0xff]   ;;  %2130 = vmatprep.subr.bf16.mxu0 %v3638_v54  ;;  %v3692_v54 = vld [vmem:[#allocation5 + $0x254] ss:$8 sps:$4 sm:$0xff]  }
 0x146   : > { %1880 = vmatpush1.bf16.msra.mxu1 %v3588_v61  ;;  %v3641_v55 = vld [vmem:[#allocation7 + $0x164] ss:$8 sps:$4 sm:$0xff]   ;;  %v3645_v61 = vld [vmem:[#allocation7 + $0x140] ss:$8 sps:$4 sm:$0xff]  }
 0x147   : > { %1881 = vmatprep.subr.bf16.mxu1 %v3593_v63  ;;  %v3648_v63 = vld [vmem:[#allocation7 + $0x130] ss:$8 sps:$4 sm:$0xff]  }
 0x14a   : > { %1882 = vmatpush1.bf16.msra.mxu1 %v3591_v0  ;;  %v3653_v0 = vld [vmem:[#allocation7 + $0x124] ss:$8 sps:$4 sm:$0xff]  }
 0x14b   : > { %1883 = vmatprep.subr.bf16.mxu1 %v3596_v1  ;;  %v3651_v1 = vld [vmem:[#allocation7 + $0x120] ss:$8 sps:$4 sm:$0xff]  }
 0x14e   : > { %1884 = vmatpush1.bf16.msra.mxu1 %v3594_v2  ;;  %v3656_v2 = vld [vmem:[#allocation7 + $0x114] ss:$8 sps:$4 sm:$0xff]  }
 0x14f   : > { %1885 = vmatprep.subr.bf16.mxu1 %v3599_v3  ;;  %v3654_v3 = vld [vmem:[#allocation7 + $0x110] ss:$8 sps:$4 sm:$0xff]  }
 0x152   : > { %1886 = vmatpush1.bf16.msra.mxu1 %v3597_v4  ;;  %v3659_v4 = vld [vmem:[#allocation7 + $0x104] ss:$8 sps:$4 sm:$0xff]  }
 0x153   : > { %1887 = vmatprep.subr.bf16.mxu1 %v3602_v5  ;;  %v3657_v5 = vld [vmem:[#allocation7 + $0x100] ss:$8 sps:$4 sm:$0xff]  }
 0x156   : > { %1888 = vmatpush1.bf16.msra.mxu1 %v3600_v6  ;;  %v3662_v6 = vld [vmem:[#allocation7 + $0x1f4] ss:$8 sps:$4 sm:$0xff]  }
 0x157   : > { %1889 = vmatprep.subr.bf16.mxu1 %v3605_v7  ;;  %v3660_v7 = vld [vmem:[#allocation7 + $0x1f0] ss:$8 sps:$4 sm:$0xff]  }
 0x15a   : > { %1890 = vmatpush1.bf16.msra.mxu1 %v3603_v8  ;;  %v3665_v8 = vld [vmem:[#allocation7 + $0x1e4] ss:$8 sps:$4 sm:$0xff]  }
 0x15b   : > { %1891 = vmatprep.subr.bf16.mxu1 %v3608_v9  ;;  %v3663_v9 = vld [vmem:[#allocation7 + $0x1e0] ss:$8 sps:$4 sm:$0xff]  }
 0x15e   : > { %1892 = vmatpush1.bf16.msra.mxu1 %v3606_v10  ;;  %v3668_v10 = vld [vmem:[#allocation7 + $0x1d4] ss:$8 sps:$4 sm:$0xff]  }
 0x15f   : > { %1893 = vmatprep.subr.bf16.mxu1 %v3611_v11  ;;  %v3666_v11 = vld [vmem:[#allocation7 + $0x1d0] ss:$8 sps:$4 sm:$0xff]  }
 0x162   : > { %1894 = vmatpush1.bf16.msra.mxu1 %v3609_v12  ;;  %v3671_v12 = vld [vmem:[#allocation7 + $0x1c4] ss:$8 sps:$4 sm:$0xff]  }
 0x163   : > { %1895 = vmatprep.subr.bf16.mxu1 %v3614_v13  ;;  %v3669_v13 = vld [vmem:[#allocation7 + $0x1c0] ss:$8 sps:$4 sm:$0xff]  }
 0x166   : > { %1896 = vmatpush2.bf16.msra.mxu1 %v3612_v14  ;;  %v3674_v14 = vld [vmem:[#allocation7 + $0x1b4] ss:$8 sps:$4 sm:$0xff]  }
 0x167   : > { %1897 = vmatprep.subr.bf16.mxu1 %v3617_v15  ;;  %v3672_v15 = vld [vmem:[#allocation7 + $0x1b0] ss:$8 sps:$4 sm:$0xff]  }
 0x16a   : > { %1898 = vmatpush2.bf16.msra.mxu1 %v3615_v57  ;;  %v3677_v57 = vld [vmem:[#allocation7 + $0x1a4] ss:$8 sps:$4 sm:$0xff]  }
 0x16b   : > { %1899 = vmatprep.subr.bf16.mxu1 %v3620_v16  ;;  %v3675_v16 = vld [vmem:[#allocation7 + $0x1a0] ss:$8 sps:$4 sm:$0xff]  }
 0x16e   : > { %1900 = vmatpush2.bf16.msra.mxu1 %v3618_v17  ;;  %v1452_v17 = vld [vmem:[%s4208_s7] sm:$0x3] }
 0x16f   : > { %1901 = vmatprep.subr.bf16.mxu1 %v3623_v18  ;;  %v535_v18 = vsub.s32 2, %v4050_v27 }
 0x172   : > { %1902 = vmatpush2.bf16.msra.mxu1 %v3621_v19  ;;  %v539_v19 = vsub.s32 3, %v4050_v27 }
 0x173   : > { %1903 = vmatprep.subr.bf16.mxu1 %v3626_v20  ;;  %v1457_v20 = vrot.slane %v1452_v17, %v4053_v30 }
 0x174   : > { %v540_v26 = vrot.slane %v4059_v31, %v539_v19 }
 0x176   : > { %1904 = vmatpush2.bf16.msra.mxu1 %v3624_v21  ;;  %v536_v21 = vrot.slane %v4059_v31, %v535_v18 }
 0x177   : > { %1905 = vmatprep.subr.bf16.mxu1 %v3629_v44 }
 0x179   : > { %v4081_v22 = vpop.f32.mrf.mxu0 }
 0x17a   : > { %1906 = vmatpush2.bf16.msra.mxu1 %v3627_v45 }
 0x17b   : > { %v4083_v23 = vpop.f32.mrf.mxu0  ;;  %1907 = vmatprep.subr.bf16.mxu1 %v3632_v47 }
 0x17d   : > { %v1162_v24 = vpop.f32.mrf.mxu0 }
 0x17e   : > { %1908 = vmatpush2.bf16.msra.mxu1 %v3630_v48  ;;  %v1461_v24 = vrot.slane %v1452_v17, %v4062_v32  ;;  %v3681_v48 = vld [vmem:[#allocation7 + $0x180] ss:$8 sps:$4 sm:$0xff]  }
 0x17f   : > { %v1163_v25 = vpop.f32.mrf.mxu0  ;;  %1909 = vmatprep.subr.bf16.mxu1 %v3635_v49  ;;  %v3686_v49 = vld [vmem:[#allocation5 + $0x274] ss:$8 sps:$4 sm:$0xff]  }
 0x182   : > { %1910 = vmatpush2.bf16.msra.mxu1 %v3633_v50  ;;  %v3689_v50 = vld [vmem:[#allocation5 + $0x264] ss:$8 sps:$4 sm:$0xff]  }
 0x183   : > { %2385 = vmatprep.subr.bf16.mxu1 %v3686_v49  ;;  %v3752_v49 = vld [vmem:[#allocation7 + $0x214] ss:$8 sps:$4 sm:$0xff]  }
 0x205   : > { %v1409_v33 = vpop.f32.mrf.mxu1 }
 0x206   : > { %v1410_v34 = vadd.f32 %v1409_v33, %v1208_v28  ;;  %v1118_v33 = vadd.f32 %v4077_v52, %v536_v21  ;;  %v3678_v52 = vld [vmem:[#allocation7 + $0x190] ss:$8 sps:$4 sm:$0xff]  }
 0x207   : > { %v1411_v35 = vpop.f32.mrf.mxu1 }
 0x208   : > { %v1412_v36 = vadd.f32 %v1411_v35, %v1212_v29  ;;  %v1416_v37 = vmax.f32 %v1410_v34, 0.0 }
 0x209   : > { %v1413_v38 = vpop.f32.mrf.mxu1 }
 0x20a   : > { %v1417_v39 = vmax.f32 %v1412_v36, 0.0  ;;  %v1418_v42 = vpack.c.bf16 %v1416_v37, %v1416_v37  ;;  %v1120_v37 = vadd.f32 %v4079_v53, %v540_v26  ;;  %v3683_v53 = vld [vmem:[#allocation7 + $0x184] ss:$8 sps:$4 sm:$0xff]  }
 0x20b   : > { %v1414_v40 = vpop.f32.mrf.mxu1 }
 0x20c   : > { %v1419_v41 = vpack.c.bf16 %v1417_v39, %v1417_v39 }
 0x20e   : > { %1656 = vmatprep.mubr.bf16.mxu0 %v1419_v41 }
 0x20f   : > { %1657 = vmatmul.mubr.bf16.vlgmr.msra.gmra.mxu0 %v1418_v42 }
 0x210   : > { %2131 = vmatpush1.bf16.msra.mxu0 %v3636_v51  ;;  %v3687_v51 = vld [vmem:[#allocation5 + $0x260] ss:$8 sps:$4 sm:$0xff]  }
 0x211   : > { %2132 = vmatprep.subr.bf16.mxu0 %v3641_v55  ;;  %v3690_v55 = vld [vmem:[#allocation5 + $0x250] ss:$8 sps:$4 sm:$0xff]  }
 0x214   : > { %2133 = vmatpush1.bf16.msra.mxu0 %v3639_v56  ;;  %v3695_v56 = vld [vmem:[#allocation5 + $0x244] ss:$8 sps:$4 sm:$0xff]  }
 0x215   : > { %2134 = vmatprep.subr.bf16.mxu0 %v3644_v58  ;;  %v3693_v58 = vld [vmem:[#allocation5 + $0x240] ss:$8 sps:$4 sm:$0xff]  }
 0x218   : > { %2135 = vmatpush1.bf16.msra.mxu0 %v3642_v59  ;;  %v3698_v59 = vld [vmem:[#allocation5 + $0x234] ss:$8 sps:$4 sm:$0xff]  }
 0x219   : > { %2136 = vmatprep.subr.bf16.mxu0 %v3647_v60  ;;  %v3696_v60 = vld [vmem:[#allocation5 + $0x230] ss:$8 sps:$4 sm:$0xff]  }
 0x21c   : > { %2137 = vmatpush1.bf16.msra.mxu0 %v3645_v61  ;;  %v3701_v61 = vld [vmem:[#allocation5 + $0x224] ss:$8 sps:$4 sm:$0xff]  }
 0x21d   : > { %2138 = vmatprep.subr.bf16.mxu0 %v3650_v62  ;;  %v3699_v62 = vld [vmem:[#allocation5 + $0x220] ss:$8 sps:$4 sm:$0xff]  }
 0x220   : > { %2139 = vmatpush1.bf16.msra.mxu0 %v3648_v63  ;;  %v3704_v63 = vld [vmem:[#allocation5 + $0x214] ss:$8 sps:$4 sm:$0xff]  }
 0x221   : > { %2140 = vmatprep.subr.bf16.mxu0 %v3653_v0  ;;  %v3702_v0 = vld [vmem:[#allocation5 + $0x210] ss:$8 sps:$4 sm:$0xff]  }
 0x224   : > { %2141 = vmatpush1.bf16.msra.mxu0 %v3651_v1  ;;  %v3707_v1 = vld [vmem:[#allocation5 + $0x204] ss:$8 sps:$4 sm:$0xff]  }
 0x225   : > { %2142 = vmatprep.subr.bf16.mxu0 %v3656_v2  ;;  %v3705_v2 = vld [vmem:[#allocation5 + $0x200] ss:$8 sps:$4 sm:$0xff]  }
 0x228   : > { %2143 = vmatpush1.bf16.msra.mxu0 %v3654_v3  ;;  %v3710_v3 = vld [vmem:[#allocation5 + $0x2f4] ss:$8 sps:$4 sm:$0xff]  }
 0x229   : > { %2144 = vmatprep.subr.bf16.mxu0 %v3659_v4  ;;  %v3708_v4 = vld [vmem:[#allocation5 + $0x2f0] ss:$8 sps:$4 sm:$0xff]  }
 0x22c   : > { %2145 = vmatpush1.bf16.msra.mxu0 %v3657_v5  ;;  %v3713_v5 = vld [vmem:[#allocation5 + $0x2e4] ss:$8 sps:$4 sm:$0xff]  }
 0x22d   : > { %2146 = vmatprep.subr.bf16.mxu0 %v3662_v6  ;;  %v3711_v6 = vld [vmem:[#allocation5 + $0x2e0] ss:$8 sps:$4 sm:$0xff]  }
 0x230   : > { %2147 = vmatpush2.bf16.msra.mxu0 %v3660_v7  ;;  %v3716_v7 = vld [vmem:[#allocation5 + $0x2d4] ss:$8 sps:$4 sm:$0xff]  }
 0x231   : > { %2148 = vmatprep.subr.bf16.mxu0 %v3665_v8  ;;  %v3714_v8 = vld [vmem:[#allocation5 + $0x2d0] ss:$8 sps:$4 sm:$0xff]  }
 0x234   : > { %2149 = vmatpush2.bf16.msra.mxu0 %v3663_v9  ;;  %v3719_v9 = vld [vmem:[#allocation5 + $0x2c4] ss:$8 sps:$4 sm:$0xff]  }
 0x235   : > { %2150 = vmatprep.subr.bf16.mxu0 %v3668_v10  ;;  %v3717_v10 = vld [vmem:[#allocation5 + $0x2c0] ss:$8 sps:$4 sm:$0xff]  }
 0x238   : > { %2151 = vmatpush2.bf16.msra.mxu0 %v3666_v11  ;;  %v3722_v11 = vld [vmem:[#allocation5 + $0x2b4] ss:$8 sps:$4 sm:$0xff]  }
 0x239   : > { %2152 = vmatprep.subr.bf16.mxu0 %v3671_v12  ;;  %v3720_v12 = vld [vmem:[#allocation5 + $0x2b0] ss:$8 sps:$4 sm:$0xff]  }
 0x23c   : > { %2153 = vmatpush2.bf16.msra.mxu0 %v3669_v13  ;;  %v3129_v13 = vld [vmem:[%s4206_s5 + $0x2] sm:$0x3] }
 0x23d   : > { %2154 = vmatprep.subr.bf16.mxu0 %v3674_v14  ;;  %v1712_v14 = vrot.slane %v3129_v13, %v4053_v30 }
 0x240   : > { %2155 = vmatpush2.bf16.msra.mxu0 %v3672_v15  ;;  %v1716_v15 = vrot.slane %v3129_v13, %v4062_v32 }
 0x241   : > { %2156 = vmatprep.subr.bf16.mxu0 %v3677_v57 }
 0x244   : > { %2157 = vmatpush2.bf16.msra.mxu0 %v3675_v16 }
 0x2cf   : > { %v1658_v25 = vpop.f32.mrf.mxu0 }
 0x2d0   : > { %v1659_v28 = vadd.f32 %v1658_v25, %v1457_v20 }
 0x2d1   : > { %v1660_v29 = vpop.f32.mrf.mxu0 }
 0x2d2   : > { %v1665_v34 = vadd.f32 %v1659_v28, %v4071_v43  ;;  %v1661_v35 = vadd.f32 %v1660_v29, %v1461_v24  ;;  %v3680_v43 = vld [vmem:[#allocation7 + $0x194] ss:$8 sps:$4 sm:$0xff]   ;;  %v3725_v28 = vld [vmem:[#allocation5 + $0x2a4] ss:$8 sps:$4 sm:$0xff]   ;;  %v3723_v29 = vld [vmem:[#allocation5 + $0x2a0] ss:$8 sps:$4 sm:$0xff]  }
 0x2d3   : > { %v1662_v36 = vpop.f32.mrf.mxu0  ;;  %2158 = vmatprep.subr.bf16.mxu0 %v3680_v43  ;;  %v3741_v43 = vld [vmem:[#allocation7 + $0x240] ss:$8 sps:$4 sm:$0xff]  }
 0x2d4   : > { %v4102_v38 = vadd.f32 %v1665_v34, %v1118_v33  ;;  %v1666_v39 = vadd.f32 %v1661_v35, %v4073_v46  ;;  %2159 = vmatpush2.bf16.msra.mxu0 %v3678_v52  ;;  %v3684_v46 = vld [vmem:[#allocation5 + $0x270] ss:$8 sps:$4 sm:$0xff]   ;;  %v3728_v33 = vld [vmem:[#allocation5 + $0x294] ss:$8 sps:$4 sm:$0xff]   ;;  %v3731_v35 = vld [vmem:[#allocation5 + $0x284] ss:$8 sps:$4 sm:$0xff]  }
 0x2d5   : > { %v1663_v40 = vpop.f32.mrf.mxu0  ;;  %2160 = vmatprep.subr.bf16.mxu0 %v3683_v53  ;;  %v3726_v34 = vld [vmem:[#allocation5 + $0x290] ss:$8 sps:$4 sm:$0xff]   ;;  %v3729_v36 = vld [vmem:[#allocation5 + $0x280] ss:$8 sps:$4 sm:$0xff]   ;;  %v3746_v52 = vld [vmem:[#allocation7 + $0x234] ss:$8 sps:$4 sm:$0xff]  }
 0x2d6   : > { %v4105_v41 = vadd.f32 %v1666_v39, %v1120_v37  ;;  %v1669_v42 = vmax.f32 %v4102_v38, 0.0  ;;  %v3732_v37 = vld [vmem:[#allocation7 + $0x270] ss:$8 sps:$4 sm:$0xff]   ;;  %v3734_v39 = vld [vmem:[#allocation7 + $0x274] ss:$8 sps:$4 sm:$0xff]  }
 0x2d7   : > { %v3737_v40 = vld [vmem:[#allocation7 + $0x264] ss:$8 sps:$4 sm:$0xff]   ;;  %v3744_v53 = vld [vmem:[#allocation7 + $0x230] ss:$8 sps:$4 sm:$0xff]  }
 0x2d8   : > { %v1670_v44 = vmax.f32 %v4105_v41, 0.0  ;;  %v1671_v47 = vpack.c.bf16 %v1669_v42, %v1669_v42  ;;  %2161 = vmatpush2.bf16.msra.mxu0 %v3681_v48  ;;  %v3735_v42 = vld [vmem:[#allocation7 + $0x260] ss:$8 sps:$4 sm:$0xff]   ;;  %v3749_v48 = vld [vmem:[#allocation7 + $0x224] ss:$8 sps:$4 sm:$0xff]  }
 0x2d9   : > { %2636 = vmatprep.subr.bf16.mxu0 %v3734_v39  ;;  %v3788_v39 = vld [vmem:[%s4209_s8 + $0x58] sm:$0xff]  }
 0x2da   : > { %v1672_v45 = vpack.c.bf16 %v1670_v44, %v1670_v44  ;;  %v3740_v44 = vld [vmem:[#allocation7 + $0x254] ss:$8 sps:$4 sm:$0xff]  }
 0x2dc   : > { %1911 = vmatprep.mubr.bf16.mxu1 %v1672_v45  ;;  %v3738_v45 = vld [vmem:[#allocation7 + $0x250] ss:$8 sps:$4 sm:$0xff]  }
 0x2dd   : > { %1912 = vmatmul.mubr.bf16.vlgmr.msra.gmra.mxu1 %v1671_v47  ;;  %v3743_v47 = vld [vmem:[#allocation7 + $0x244] ss:$8 sps:$4 sm:$0xff]  }
 0x2de   : > { %2386 = vmatpush1.bf16.msra.mxu1 %v3684_v46  ;;  %v3747_v46 = vld [vmem:[#allocation7 + $0x220] ss:$8 sps:$4 sm:$0xff]  }
 0x2df   : > { %2387 = vmatprep.subr.bf16.mxu1 %v3689_v50  ;;  %v3750_v50 = vld [vmem:[#allocation7 + $0x210] ss:$8 sps:$4 sm:$0xff]  }
 0x2e2   : > { %2388 = vmatpush1.bf16.msra.mxu1 %v3687_v51  ;;  %v3755_v51 = vld [vmem:[#allocation7 + $0x204] ss:$8 sps:$4 sm:$0xff]  }
 0x2e3   : > { %2389 = vmatprep.subr.bf16.mxu1 %v3692_v54  ;;  %v3753_v54 = vld [vmem:[#allocation7 + $0x200] ss:$8 sps:$4 sm:$0xff]  }
 0x2e6   : > { %2390 = vmatpush1.bf16.msra.mxu1 %v3690_v55  ;;  %v3758_v55 = vld [vmem:[#allocation7 + $0x2f4] ss:$8 sps:$4 sm:$0xff]  }
 0x2e7   : > { %2391 = vmatprep.subr.bf16.mxu1 %v3695_v56  ;;  %v3756_v56 = vld [vmem:[#allocation7 + $0x2f0] ss:$8 sps:$4 sm:$0xff]  }
 0x2ea   : > { %2392 = vmatpush1.bf16.msra.mxu1 %v3693_v58  ;;  %v3761_v58 = vld [vmem:[#allocation7 + $0x2e4] ss:$8 sps:$4 sm:$0xff]  }
 0x2eb   : > { %2393 = vmatprep.subr.bf16.mxu1 %v3698_v59  ;;  %v3759_v59 = vld [vmem:[#allocation7 + $0x2e0] ss:$8 sps:$4 sm:$0xff]  }
 0x2ee   : > { %2394 = vmatpush1.bf16.msra.mxu1 %v3696_v60  ;;  %v3764_v60 = vld [vmem:[#allocation7 + $0x2d4] ss:$8 sps:$4 sm:$0xff]  }
 0x2ef   : > { %2395 = vmatprep.subr.bf16.mxu1 %v3701_v61  ;;  %v3762_v61 = vld [vmem:[#allocation7 + $0x2d0] ss:$8 sps:$4 sm:$0xff]  }
 0x2f2   : > { %2396 = vmatpush1.bf16.msra.mxu1 %v3699_v62  ;;  %v3767_v62 = vld [vmem:[#allocation7 + $0x2c4] ss:$8 sps:$4 sm:$0xff]  }
 0x2f3   : > { %2397 = vmatprep.subr.bf16.mxu1 %v3704_v63  ;;  %v3765_v63 = vld [vmem:[#allocation7 + $0x2c0] ss:$8 sps:$4 sm:$0xff]  }
 0x2f6   : > { %2398 = vmatpush1.bf16.msra.mxu1 %v3702_v0  ;;  %v3770_v0 = vld [vmem:[#allocation7 + $0x2b4] ss:$8 sps:$4 sm:$0xff]  }
 0x2f7   : > { %2399 = vmatprep.subr.bf16.mxu1 %v3707_v1  ;;  %v3768_v1 = vld [vmem:[#allocation7 + $0x2b0] ss:$8 sps:$4 sm:$0xff]  }
 0x2fa   : > { %2400 = vmatpush1.bf16.msra.mxu1 %v3705_v2  ;;  %v3773_v2 = vld [vmem:[#allocation7 + $0x2a4] ss:$8 sps:$4 sm:$0xff]  }
 0x2fb   : > { %2401 = vmatprep.subr.bf16.mxu1 %v3710_v3  ;;  %v3771_v3 = vld [vmem:[#allocation7 + $0x2a0] ss:$8 sps:$4 sm:$0xff]  }
 0x2fe   : > { %2402 = vmatpush2.bf16.msra.mxu1 %v3708_v4  ;;  %v3162_v4 = vld [vmem:[%s4208_s7 + $0x2] sm:$0x3] }
 0x2ff   : > { %2403 = vmatprep.subr.bf16.mxu1 %v3713_v5  ;;  %v543_v5 = vsub.s32 4, %v4050_v27 }
 0x302   : > { %2404 = vmatpush2.bf16.msra.mxu1 %v3711_v6  ;;  %v547_v6 = vsub.s32 5, %v4050_v27 }
 0x303   : > { %2405 = vmatprep.subr.bf16.mxu1 %v3716_v7  ;;  %v1963_v7 = vrot.slane %v3162_v4, %v4053_v30 }
 0x306   : > { %2406 = vmatpush2.bf16.msra.mxu1 %v3714_v8  ;;  %v544_v8 = vrot.slane %v4059_v31, %v543_v5 }
 0x307   : > { %2407 = vmatprep.subr.bf16.mxu1 %v3719_v9  ;;  %v1967_v9 = vrot.slane %v3162_v4, %v4062_v32 }
 0x30a   : > { %2408 = vmatpush2.bf16.msra.mxu1 %v3717_v10 }
 0x30b   : > { %2409 = vmatprep.subr.bf16.mxu1 %v3722_v11  ;;  %v548_v11 = vrot.slane %v4059_v31, %v547_v6 }
 0x30e   : > { %2410 = vmatpush2.bf16.msra.mxu1 %v3720_v12 }
 0x30f   : > { %2411 = vmatprep.subr.bf16.mxu1 %v3725_v28  ;;  %v3781_v28 = vld [vmem:[%s4209_s8 + $0x38] sm:$0xff]  }
 0x312   : > { %2412 = vmatpush2.bf16.msra.mxu1 %v3723_v29  ;;  %v3782_v29 = vld [vmem:[%s4209_s8 + $0x70] sm:$0xff]  }
 0x313   : > { %2413 = vmatprep.subr.bf16.mxu1 %v3728_v33  ;;  %v3783_v33 = vld [vmem:[%s4209_s8 + $0x30] sm:$0xff]  }
 0x316   : > { %2414 = vmatpush2.bf16.msra.mxu1 %v3726_v34  ;;  %v3784_v34 = vld [vmem:[%s4209_s8 + $0x68] sm:$0xff]  }
 0x317   : > { %2415 = vmatprep.subr.bf16.mxu1 %v3731_v35  ;;  %v3785_v35 = vld [vmem:[%s4209_s8 + $0x28] sm:$0xff]  }
 0x31a   : > { %2416 = vmatpush2.bf16.msra.mxu1 %v3729_v36  ;;  %v3786_v36 = vld [vmem:[%s4209_s8 + $0x60] sm:$0xff]  }
 0x39d   : > { %v1913_v57 = vpop.f32.mrf.mxu1 }
 0x39e   : > { %v1914_v16 = vadd.f32 %v1913_v57, %v1712_v14  ;;  %v1159_v14 = vadd.f32 %v4081_v22, %v544_v8  ;;  %v3776_v22 = vld [vmem:[#allocation7 + $0x294] ss:$8 sps:$4 sm:$0xff]  }
 0x39f   : > { %v1915_v17 = vpop.f32.mrf.mxu1 }
 0x3a0   : > { %v1916_v18 = vadd.f32 %v1915_v17, %v1716_v15  ;;  %v1920_v19 = vmax.f32 %v1914_v16, 0.0  ;;  %v1161_v17 = vadd.f32 %v4083_v23, %v548_v11  ;;  %v3779_v23 = vld [vmem:[#allocation7 + $0x284] ss:$8 sps:$4 sm:$0xff]  }
 0x3a1   : > { %v1917_v20 = vpop.f32.mrf.mxu1 }
 0x3a2   : > { %v1921_v21 = vmax.f32 %v1916_v18, 0.0  ;;  %v1922_v26 = vpack.c.bf16 %v1920_v19, %v1920_v19 }
 0x3a3   : > { %v1918_v24 = vpop.f32.mrf.mxu1 }
 0x3a4   : > { %v1923_v25 = vpack.c.bf16 %v1921_v21, %v1921_v21 }
 0x3a6   : > { %2162 = vmatprep.mubr.bf16.mxu0 %v1923_v25 }
 0x3a7   : > { %2163 = vmatmul.mubr.bf16.vlgmr.msra.gmra.mxu0 %v1922_v26  ;;  %v3777_v26 = vld [vmem:[#allocation7 + $0x280] ss:$8 sps:$4 sm:$0xff]  }
 0x3a8   : > { %2637 = vmatpush1.bf16.msra.mxu0 %v3732_v37  ;;  %v3787_v37 = vld [vmem:[%s4209_s8 + $0x20] sm:$0xff]  }
 0x3a9   : > { %2638 = vmatprep.subr.bf16.mxu0 %v3737_v40  ;;  %v3789_v40 = vld [vmem:[%s4209_s8 + $0x18] sm:$0xff]  }
 0x3ac   : > { %2639 = vmatpush1.bf16.msra.mxu0 %v3735_v42  ;;  %v3195_v42 = vld [vmem:[%s4206_s5 + $0x4] sm:$0x3] }
 0x3ad   : > { %2640 = vmatprep.subr.bf16.mxu0 %v3740_v44  ;;  %v2218_v44 = vrot.slane %v3195_v42, %v4053_v30 }
 0x3b0   : > { %2641 = vmatpush1.bf16.msra.mxu0 %v3738_v45  ;;  %v2222_v45 = vrot.slane %v3195_v42, %v4062_v32 }
 0x3b1   : > { %2642 = vmatprep.subr.bf16.mxu0 %v3743_v47 }
 0x3b4   : > { %2643 = vmatpush1.bf16.msra.mxu0 %v3741_v43 }
 0x3b5   : > { %2644 = vmatprep.subr.bf16.mxu0 %v3746_v52 }
 0x3b8   : > { %2645 = vmatpush1.bf16.msra.mxu0 %v3744_v53 }
 0x3b9   : > { %2646 = vmatprep.subr.bf16.mxu0 %v3749_v48 }
 0x3bc   : > { %2647 = vmatpush1.bf16.msra.mxu0 %v3747_v46 }
 0x3bd   : > { %2648 = vmatprep.subr.bf16.mxu0 %v3752_v49 }
 0x3c0   : > { %2649 = vmatpush1.bf16.msra.mxu0 %v3750_v50 }
 0x3c1   : > { %2650 = vmatprep.subr.bf16.mxu0 %v3755_v51 }
 0x3c4   : > { %2651 = vmatpush1.bf16.msra.mxu0 %v3753_v54 }
 0x3c5   : > { %2652 = vmatprep.subr.bf16.mxu0 %v3758_v55  ;;  %v3790_v55 = vld [vmem:[%s4209_s8 + $0x50] sm:$0xff]  }
 0x3c8   : > { %2653 = vmatpush2.bf16.msra.mxu0 %v3756_v56  ;;  %v3791_v56 = vld [vmem:[%s4209_s8 + $0x10] sm:$0xff]  }
 0x3c9   : > { %2654 = vmatprep.subr.bf16.mxu0 %v3761_v58  ;;  %v3792_v58 = vld [vmem:[%s4209_s8 + $0x48] sm:$0xff]  }
 0x3cc   : > { %2655 = vmatpush2.bf16.msra.mxu0 %v3759_v59  ;;  %v3793_v59 = vld [vmem:[%s4209_s8 + $0x8] sm:$0xff]  }
 0x3cd   : > { %2656 = vmatprep.subr.bf16.mxu0 %v3764_v60  ;;  %v3794_v60 = vld [vmem:[%s4209_s8 + $0x40] sm:$0xff]  }
 0x3d0   : > { %2657 = vmatpush2.bf16.msra.mxu0 %v3762_v61  ;;  %v3795_v61 = vld [vmem:[%s4209_s8] sm:$0xff]  }
 0x3d1   : > { %2658 = vmatprep.subr.bf16.mxu0 %v3767_v62  ;;  %v3228_v62 = vld [vmem:[%s4208_s7 + $0x4] sm:$0x3] }
 0x3d4   : > { %2659 = vmatpush2.bf16.msra.mxu0 %v3765_v63  ;;  %v2469_v63 = vrot.slane %v3228_v62, %v4053_v30 }
 0x3d5   : > { %2660 = vmatprep.subr.bf16.mxu0 %v3770_v0  ;;  %v2473_v0 = vrot.slane %v3228_v62, %v4062_v32  ;;  %v2716_v32 = vstv %s2715_s17 }
 0x3d8   : > { %2661 = vmatpush2.bf16.msra.mxu0 %v3768_v1 }
 0x3d9   : > { %2662 = vmatprep.subr.bf16.mxu0 %v3773_v2 }
 0x3dc   : > { %2663 = vmatpush2.bf16.msra.mxu0 %v3771_v3 }
 0x3dd   : > { %2664 = vmatprep.subr.bf16.mxu0 %v3776_v22 }
 0x467   : > { %v2164_v10 = vpop.f32.mrf.mxu0 }
 0x468   : > { %v2165_v12 = vadd.f32 %v2164_v10, %v1963_v7 }
 0x469   : > { %v2166_v13 = vpop.f32.mrf.mxu0 }
 0x46a   : > { %v2171_v15 = vadd.f32 %v2165_v12, %v4102_v38  ;;  %v2167_v57 = vadd.f32 %v2166_v13, %v1967_v9  ;;  %v3774_v38 = vld [vmem:[#allocation7 + $0x290] ss:$8 sps:$4 sm:$0xff]  }
 0x46b   : > { %v2168_v16 = vpop.f32.mrf.mxu0  ;;  %2665 = vmatpush2.bf16.msra.mxu0 %v3774_v38 }
 0x46c   : > { %v4126_v27 = vadd.f32 %v2171_v15, %v1159_v14  ;;  %v2172_v18 = vadd.f32 %v2167_v57, %v4105_v41  ;;  %2666 = vmatprep.subr.bf16.mxu0 %v3779_v23  ;;  %v3780_v41 = vld [vmem:[%s4209_s8 + $0x78] sm:$0xff]  }
 0x46d   : > { %v2169_v19 = vpop.f32.mrf.mxu0  ;;  %3281 = vmatprep.subr.bf16.mxu1 %v3780_v41 }
 0x46e   : > { %v4129_v20 = vadd.f32 %v2172_v18, %v1161_v17  ;;  %v2175_v21 = vmax.f32 %v4126_v27, 0.0 }
 0x46f   : > { %2667 = vmatpush2.bf16.msra.mxu0 %v3777_v26 }
 0x470   : > { %v2176_v31 = vmax.f32 %v4129_v20, 0.0  ;;  %v2177_v25 = vpack.c.bf16 %v2175_v21, %v2175_v21 }
 0x472   : > { %v2178_v24 = vpack.c.bf16 %v2176_v31, %v2176_v31 }
 0x474   : > { %2417 = vmatprep.mubr.bf16.mxu1 %v2178_v24 }
 0x475   : > { %2418 = vmatmul.mubr.bf16.vlgmr.msra.gmra.mxu1 %v2177_v25 }
 0x476   : > { %3282 = vmatpush3.bf16.msra.mxu1 %v3781_v28 }
 0x477   : > { %3283 = vmatprep.subr.bf16.mxu1 %v3782_v29 }
 0x47a   : > { %3284 = vmatpush3.bf16.msra.mxu1 %v3783_v33 }
 0x47b   : > { %3285 = vmatprep.subr.bf16.mxu1 %v3784_v34 }
 0x47e   : > { %3286 = vmatpush3.bf16.msra.mxu1 %v3785_v35 }
 0x47f   : > { %3287 = vmatprep.subr.bf16.mxu1 %v3786_v36 }
 0x482   : > { %3288 = vmatpush3.bf16.msra.mxu1 %v3787_v37 }
 0x483   : > { %3289 = vmatprep.subr.bf16.mxu1 %v3788_v39 }
 0x486   : > { %3290 = vmatpush3.bf16.msra.mxu1 %v3789_v40 }
 0x487   : > { %3291 = vmatprep.subr.bf16.mxu1 %v3790_v55 }
 0x48a   : > { %3292 = vmatpush3.bf16.msra.mxu1 %v3791_v56 }
 0x48b   : > { %3293 = vmatprep.subr.bf16.mxu1 %v3792_v58 }
 0x48e   : > { %3294 = vmatpush3.bf16.msra.mxu1 %v3793_v59 }
 0x48f   : > { %3295 = vmatprep.subr.bf16.mxu1 %v3794_v60 }
 0x492   : > { %3296 = vmatpush3.bf16.msra.mxu1 %v3795_v61 }
 0x535   : > { %v2419_v47 = vpop.f32.mrf.mxu1 }
 0x536   : > { %v2420_v43 = vadd.f32 %v2419_v47, %v2218_v44 }
 0x537   : > { %v2421_v52 = vpop.f32.mrf.mxu1 }
 0x538   : > { %v2422_v53 = vadd.f32 %v2421_v52, %v2222_v45  ;;  %v2426_v48 = vmax.f32 %v2420_v43, 0.0 }
 0x539   : > { %v2423_v46 = vpop.f32.mrf.mxu1 }
 0x53a   : > { %v2427_v49 = vmax.f32 %v2422_v53, 0.0  ;;  %v2428_v54 = vpack.c.bf16 %v2426_v48, %v2426_v48 }
 0x53b   : > { %v2424_v50 = vpop.f32.mrf.mxu1 }
 0x53c   : > { %v2429_v51 = vpack.c.bf16 %v2427_v49, %v2427_v49 }
 0x53e   : > { %2668 = vmatprep.mubr.bf16.mxu0 %v2429_v51 }
 0x53f   : > { %2669 = vmatmul.mubr.bf16.vlgmr.msra.gmra.mxu0 %v2428_v54 }
 0x5ff   : > { %v2670_v1 = vpop.f32.mrf.mxu0 }
 0x600   : > { %v2671_v2 = vadd.f32 %v2670_v1, %v2469_v63 }
 0x601   : > { %v2672_v3 = vpop.f32.mrf.mxu0 }
 0x602   : > { %v2677_v4 = vadd.f32 %v2671_v2, %v4126_v27  ;;  %v2673_v5 = vadd.f32 %v2672_v3, %v2473_v0 }
 0x603   : > { %v2674_v6 = vpop.f32.mrf.mxu0 }
 0x604   : > { %v2678_v7 = vadd.f32 %v2673_v5, %v4129_v20  ;;  %v2679_v8 = vmax.f32 %v2677_v4, 0.0 }
 0x605   : > { %v2675_v9 = vpop.f32.mrf.mxu0 }
 0x606   : > { %v2680_v10 = vmax.f32 %v2678_v7, 0.0  ;;  %v2681_v12 = vpack.c.bf16 %v2679_v8, %v2679_v8 }
 0x608   : > { %v2682_v11 = vpack.c.bf16 %v2680_v10, %v2680_v10 }
 0x60a   : > { %2845 = vmatprep.mubr.bf16.mxu1 %v2682_v11 }
 0x60b   : > { %2846 = vmatmul.mubr.bf16.vlgmr.msra.gmra.mxu1 %v2681_v12 }
 0x6cb   : > { %v3297_v30 = vpop.f32.mrf.mxu1 }
 0x6cd   : > { %v3298_v13 = vpop.f32.mrf.mxu1 }
 0x6ce   : > { %v3299_v14 = vadd.f32 %v3298_v13, %v3297_v30 }
 0x6cf   : > { %v3300_v15 = vpop.f32.mrf.mxu1 }
 0x6d0   : > { %v2848_v57 = vadd.f32 %v3299_v14, %v2716_v32 }
 0x6d1   : > { %v3301_v16 = vpop.f32.mrf.mxu1 }
 0x6d2   : > { %2854 = vst.msk [vmem:[%s422_s21] sm:$0xff] %vm2853_vm0, %v2848_v57 }
 0x6d3 PF: > { %s23_s15 = sadd.s32 1, %s3888_s15  }
 0x6d4   : > { %p20_p2 = scmp.ge.s32.totalorder %s23_s15, 4  }
 0x6d6   :  { %22 = sbr.rel (!%p20_p2) target bundleno = 4 (0x4), region = 114 }
 0x6db   :  { %2874 = vsyncpa [#allocation4], 1 }
 0x6dc   :  { %2876 = vsyncpa [#allocation4 + $0x1], 1 }
 0x6dd   :  { %2877 = vsyncpa [#allocation6], 1 }

</bundles_post_ra>
